<compile_context>
chip_gen: v6e
topology: v6e:2x2x1
jax: 0.10.0
libtpu: 0.0.40
codegen_flags: <defaults>
</compile_context>

<pallas_src>
import functools

import jax
import jax.numpy as jnp
from jax import lax
from jax.experimental import pallas as pl
from jax.experimental.pallas import tpu as pltpu

NEG = -1e9  # "minus infinity" surrogate; exp(NEG - x) == 0 exactly in f32.


def _crf_kernel(emis_ref, tag_ref, mask_ref, start_ref, end_ref, trans_ref,
                llh_ref, num_sc, alpha_sc, lastoh_sc, ohprev_sc):
  """One (batch-tile, seq-chunk) grid step of the CRF log-likelihood.

  emis_ref : (SC, Bt, Tp) f32  emission scores for this chunk (pads = 0)
  tag_ref  : (SC, Bt, 1)  i32  gold tags
  mask_ref : (SC, Bt, 1)  f32  prefix mask
  start_ref: (1, Tp)      f32  start transitions (pad = NEG)
  end_ref  : (1, Tp)      f32  end transitions   (pad = NEG)
  trans_ref: (Tp, Tp)     f32  transitions       (pad = NEG)
  llh_ref  : (Bt, 1)      f32  output, written on the last sequence chunk
  scratch (persists across the sequence-chunk grid axis):
    num_sc    (Bt, 1)   numerator accumulator
    alpha_sc  (Bt, Tp)  forward-algorithm log-probabilities
    lastoh_sc (Bt, Tp)  one-hot of tag at the last valid position so far
    ohprev_sc (Bt, Tp)  one-hot of the previous step's tag
  """
  SC, Bt, Tp = emis_ref.shape
  s_idx = pl.program_id(1)

  start = start_ref[...]                                   # (1, Tp)
  trans = trans_ref[...]                                   # (Tp, Tp)
  # exp-space transitions for the MXU recursion; subtract max for stability.
  tmax = jnp.max(jnp.max(trans, axis=1, keepdims=True), axis=0, keepdims=True)
  exp_trans = jnp.exp(trans - tmax)                        # padding -> exactly 0

  lane = lax.broadcasted_iota(jnp.int32, (Bt, Tp), 1)

  def one_hot(j):
    return (lane == tag_ref[j]).astype(jnp.float32)        # (Bt, Tp)

  def step(j, carry):
    """Processes the sequence position at local index j (global index >= 1)."""
    oh = one_hot(j)
    m_j = mask_ref[j]                                      # (Bt, 1)
    em = emis_ref[j]                                       # (Bt, Tp)

    # ---- numerator: emission + transition gathers via in-kernel one-hot ----
    gath_e = jnp.sum(em * oh, axis=-1, keepdims=True)      # emis[i, b, tag_i]
    row = jnp.dot(ohprev_sc[...], trans,
                  preferred_element_type=jnp.float32)      # trans[tag_{i-1}, :]
    gath_t = jnp.sum(row * oh, axis=-1, keepdims=True)     # trans[tag_{i-1}, tag_i]
    num_sc[...] += (gath_e + gath_t) * m_j
    lastoh_sc[...] = jnp.where(m_j > 0.0, oh, lastoh_sc[...])
    ohprev_sc[...] = oh

    # ---- denominator: forward recursion on the MXU in exp-space ----
    alpha = alpha_sc[...]
    mrow = jnp.max(alpha, axis=-1, keepdims=True)          # (Bt, 1)
    p = jnp.exp(alpha - mrow)
    s = jnp.dot(p, exp_trans, preferred_element_type=jnp.float32)
    alpha_new = jnp.log(s) + mrow + tmax + em              # padded lanes -> -inf
    alpha_sc[...] = jnp.where(m_j > 0.0, alpha_new, alpha)
    return carry

  unroll = True if SC <= 8 else 8

  @pl.when(s_idx == 0)
  def _():
    # Initialize the carried state from global step 0 (mask[0] == 1 required).
    oh0 = one_hot(0)
    em0 = emis_ref[0]
    m0 = mask_ref[0]
    num_sc[...] = (jnp.sum(start * oh0, axis=-1, keepdims=True)
                   + jnp.sum(em0 * oh0, axis=-1, keepdims=True) * m0)
    alpha_sc[...] = start + em0
    lastoh_sc[...] = oh0
    ohprev_sc[...] = oh0
    lax.fori_loop(1, SC, step, 0, unroll=unroll)

  @pl.when(s_idx > 0)
  def _():
    lax.fori_loop(0, SC, step, 0, unroll=unroll)

  @pl.when(s_idx == pl.num_programs(1) - 1)
  def _():
    end = end_ref[...]                                     # (1, Tp)
    num = num_sc[...] + jnp.sum(end * lastoh_sc[...], axis=-1, keepdims=True)
    final = alpha_sc[...] + end
    mf = jnp.max(final, axis=-1, keepdims=True)
    denom = jnp.log(jnp.sum(jnp.exp(final - mf), axis=-1, keepdims=True)) + mf
    llh_ref[...] = num - denom


def _round_up(x, m):
  return ((x + m - 1) // m) * m


@functools.partial(jax.jit,
                   static_argnames=("reduce", "s_chunk", "batch_tile"))
def crf_forward(emissions, tags, mask, start_trans, end_trans, trans,
                reduce=True, s_chunk=32, batch_tile=256):
  """CRF.forward: log-likelihood of `tags` under emission scores.

  emissions: (S, B, T) f32, tags: (S, B) int, mask: (S, B) {0,1} prefix mask
  with mask[0] all ones (as the PyTorch module asserts).
  Returns a scalar (reduce=True) or a (B,) array (reduce=False).
  """
  S, B, T = emissions.shape
  Tp = _round_up(max(T, 1), 128)
  Bt = min(_round_up(B, 8), _round_up(batch_tile, 8))     # batch tile (parallel)
  Bp = _round_up(B, Bt)
  SC = min(S, s_chunk)                                    # sequence chunk
  Sp = _round_up(S, SC)
  n_b, n_s = Bp // Bt, Sp // SC

  # Padding: emissions/tags/mask pad with zeros (inert: masked or one-hot 0),
  # transition parameters pad with NEG so exp() of padded entries is exactly 0.
  emis_p = jnp.zeros((Sp, Bp, Tp), jnp.float32)
  emis_p = emis_p.at[:S, :B, :T].set(emissions.astype(jnp.float32))
  tags_p = jnp.zeros((Sp, Bp, 1), jnp.int32)
  tags_p = tags_p.at[:S, :B, 0].set(tags.astype(jnp.int32))
  mask_p = jnp.zeros((Sp, Bp, 1), jnp.float32)
  mask_p = mask_p.at[:S, :B, 0].set(mask.astype(jnp.float32))
  start_p = jnp.full((1, Tp), NEG, jnp.float32).at[0, :T].set(
      start_trans.astype(jnp.float32))
  end_p = jnp.full((1, Tp), NEG, jnp.float32).at[0, :T].set(
      end_trans.astype(jnp.float32))
  trans_p = jnp.full((Tp, Tp), NEG, jnp.float32).at[:T, :T].set(
      trans.astype(jnp.float32))

  llh_p = pl.pallas_call(
      _crf_kernel,
      out_shape=jax.ShapeDtypeStruct((Bp, 1), jnp.float32),
      grid=(n_b, n_s),
      in_specs=[
          pl.BlockSpec((SC, Bt, Tp), lambda b, s: (s, b, 0)),  # emissions
          pl.BlockSpec((SC, Bt, 1), lambda b, s: (s, b, 0)),   # tags (int32)
          pl.BlockSpec((SC, Bt, 1), lambda b, s: (s, b, 0)),   # mask
          pl.BlockSpec((1, Tp), lambda b, s: (0, 0)),          # start
          pl.BlockSpec((1, Tp), lambda b, s: (0, 0)),          # end
          pl.BlockSpec((Tp, Tp), lambda b, s: (0, 0)),         # transitions
      ],
      out_specs=pl.BlockSpec((Bt, 1), lambda b, s: (b, 0)),
      scratch_shapes=[
          pltpu.VMEM((Bt, 1), jnp.float32),    # numerator accumulator
          pltpu.VMEM((Bt, Tp), jnp.float32),   # alpha (forward log-probs)
          pltpu.VMEM((Bt, Tp), jnp.float32),   # last-tag one-hot
          pltpu.VMEM((Bt, Tp), jnp.float32),   # previous-step one-hot
      ],
      compiler_params=pltpu.CompilerParams(
          dimension_semantics=("parallel", "arbitrary"),
          vmem_limit_bytes=64 * 1024 * 1024),
  )(emis_p, tags_p, mask_p, start_p, end_p, trans_p)

  llh = llh_p[:B, 0]
  return jnp.sum(llh) if reduce else llh


def crf_forward_ref(emissions, tags, mask, start, end, trans, reduce=True):
  """Pure-JAX port of the PyTorch CRF.forward for verification."""
  S, B, T = emissions.shape
  maskf = mask.astype(jnp.float32)
  barange = jnp.arange(B)

  llh = start[tags[0]]
  for i in range(S - 1):
    cur, nxt = tags[i], tags[i + 1]
    llh += emissions[i][barange, cur] * maskf[i]
    llh += trans[cur, nxt] * maskf[i + 1]
  last_idx = maskf.sum(0).astype(jnp.int32) - 1
  last_tags = tags[last_idx, barange]
  llh += end[last_tags]
  llh += emissions[-1][barange, last_tags] * maskf[-1]

  logp = start[None, :] + emissions[0]
  for i in range(1, S):
    sc = logp[:, :, None] + trans[None, :, :] + emissions[i][:, None, :]
    sc = jax.scipy.special.logsumexp(sc, axis=1)
    logp = sc * maskf[i][:, None] + logp * (1.0 - maskf[i])[:, None]
  logp = logp + end[None, :]
  denom = jax.scipy.special.logsumexp(logp, axis=1)
  out = llh - denom
  return jnp.sum(out) if reduce else out


# TODO(synk): CRF.decode (Viterbi traceback returning ragged Python lists) is
# host-side control flow, not part of forward(), and is not implemented here.

if __name__ == "__main__":
  key = jax.random.PRNGKey(0)
  k_em, k_tag, k_st, k_en, k_tr = jax.random.split(key, 5)

  S, B, T = 8, 2, 5   # seq_length, batch, num_tags

  emissions = jax.random.normal(k_em, (S, B, T), dtype=jnp.float32)
  tags = jax.random.randint(k_tag, (S, B), 0, T, dtype=jnp.int32)
  # valid-prefix mask; mask[0] is all ones as the module requires
  lengths = jnp.array([S, S - 2], dtype=jnp.int32)
  mask = (jnp.arange(S)[:, None] < lengths[None, :]).astype(jnp.uint8)

  # Parameters: uniform(-0.1, 0.1), matching reset_parameters()
  start_trans = jax.random.uniform(k_st, (T,), jnp.float32, -0.1, 0.1)
  end_trans = jax.random.uniform(k_en, (T,), jnp.float32, -0.1, 0.1)
  trans = jax.random.uniform(k_tr, (T, T), jnp.float32, -0.1, 0.1)

  # s_chunk=4 -> two pipelined sequence chunks, exercising the carried state.
  out_vec = crf_forward(emissions, tags, mask, start_trans, end_trans, trans,
                        reduce=False, s_chunk=4)
  out_sum = crf_forward(emissions, tags, mask, start_trans, end_trans, trans,
                        reduce=True, s_chunk=4)
  out_vec, out_sum = jax.block_until_ready((out_vec, out_sum))

  ref_vec = crf_forward_ref(emissions, tags, mask, start_trans, end_trans,
                            trans, reduce=False)
  assert jnp.allclose(out_vec, ref_vec, rtol=1e-4, atol=1e-4), (out_vec, ref_vec)
  assert jnp.allclose(out_sum, jnp.sum(ref_vec), rtol=1e-4, atol=1e-4), (
      out_sum, jnp.sum(ref_vec))

  print("KERNEL_OK")
</pallas_src>

<mosaic_0001>
module attributes {stable_mosaic.version = 11 : i64} {
  func.func @_crf_kernel(%arg0: i32, %arg1: i32, %arg2: memref<4x8x128xf32, #tpu.memory_space<vmem>>, %arg3: memref<4x8x1xi32, #tpu.memory_space<vmem>>, %arg4: memref<4x8x1xf32, #tpu.memory_space<vmem>>, %arg5: memref<1x128xf32, #tpu.memory_space<vmem>>, %arg6: memref<1x128xf32, #tpu.memory_space<vmem>>, %arg7: memref<128x128xf32, #tpu.memory_space<vmem>>, %arg8: memref<8x1xf32, #tpu.memory_space<vmem>>, %arg9: memref<8x1xf32, #tpu.memory_space<vmem>>, %arg10: memref<8x128xf32, #tpu.memory_space<vmem>>, %arg11: memref<8x128xf32, #tpu.memory_space<vmem>>, %arg12: memref<8x128xf32, #tpu.memory_space<vmem>>) attributes {dimension_semantics = [#tpu.dimension_semantics<parallel>, #tpu.dimension_semantics<arbitrary>], iteration_bounds = array<i64: 1, 2>, scalar_prefetch = 0 : i64, scratch_operands = 4 : i64, tpu.core_type = #tpu.core_type<tc>, window_params = [{transform_indices = @transform_0, window_bounds = array<i64: 4, 8, 128>}, {transform_indices = @transform_1, window_bounds = array<i64: 4, 8, 1>}, {transform_indices = @transform_2, window_bounds = array<i64: 4, 8, 1>}, {pipeline_mode = #tpu.pipeline_mode<synchronous>, transform_indices = @transform_3, window_bounds = array<i64: 1, 128>}, {pipeline_mode = #tpu.pipeline_mode<synchronous>, transform_indices = @transform_4, window_bounds = array<i64: 1, 128>}, {pipeline_mode = #tpu.pipeline_mode<synchronous>, transform_indices = @transform_5, window_bounds = array<i64: 128, 128>}, {transform_indices = @transform_6, window_bounds = array<i64: 8, 1>}]} {
    %c0 = arith.constant 0 : index
    %c0_0 = arith.constant 0 : index
    %0 = vector.load %arg5[%c0, %c0_0] : memref<1x128xf32, #tpu.memory_space<vmem>>, vector<1x128xf32>
    %c0_1 = arith.constant 0 : index
    %c0_2 = arith.constant 0 : index
    %1 = vector.load %arg7[%c0_1, %c0_2] : memref<128x128xf32, #tpu.memory_space<vmem>>, vector<128x128xf32>
    %cst = arith.constant dense<0xFF800000> : vector<128xf32>
    %2 = vector.multi_reduction <maximumf>, %1, %cst [1] : vector<128x128xf32> to vector<128xf32>
    %3 = vector.shape_cast %2 : vector<128xf32> to vector<128x1xf32>
    %cst_3 = arith.constant dense<0xFF800000> : vector<1xf32>
    %4 = vector.multi_reduction <maximumf>, %3, %cst_3 [0] : vector<128x1xf32> to vector<1xf32>
    %5 = vector.shape_cast %4 : vector<1xf32> to vector<1x1xf32>
    %6 = vector.broadcast %5 : vector<1x1xf32> to vector<128x128xf32>
    %7 = arith.subf %1, %6 : vector<128x128xf32>
    %8 = math.exp %7 : vector<128x128xf32>
    %9 = tpu.iota {dimensions = array<i32: 1>} : vector<8x128xi32>
    %c0_i32 = arith.constant 0 : i32
    %10 = arith.cmpi eq, %arg1, %c0_i32 : i32
    %11 = arith.extui %10 : i1 to i32
    %c0_i32_4 = arith.constant 0 : i32
    %12 = arith.cmpi ne, %11, %c0_i32_4 : i32
    scf.if %12 {
      %c0_8 = arith.constant 0 : index
      %c0_9 = arith.constant 0 : index
      %c0_10 = arith.constant 0 : index
      %19 = vector.load %arg3[%c0_8, %c0_9, %c0_10] : memref<4x8x1xi32, #tpu.memory_space<vmem>>, vector<1x8x1xi32>
      %20 = vector.shape_cast %19 : vector<1x8x1xi32> to vector<8x1xi32>
      %21 = vector.broadcast %20 : vector<8x1xi32> to vector<8x128xi32>
      %22 = arith.cmpi eq, %9, %21 : vector<8x128xi32>
      %23 = arith.extui %22 : vector<8x128xi1> to vector<8x128xi32>
      %24 = arith.sitofp %23 : vector<8x128xi32> to vector<8x128xf32>
      %c0_11 = arith.constant 0 : index
      %c0_12 = arith.constant 0 : index
      %c0_13 = arith.constant 0 : index
      %25 = vector.load %arg2[%c0_11, %c0_12, %c0_13] : memref<4x8x128xf32, #tpu.memory_space<vmem>>, vector<1x8x128xf32>
      %26 = vector.shape_cast %25 : vector<1x8x128xf32> to vector<8x128xf32>
      %c0_14 = arith.constant 0 : index
      %c0_15 = arith.constant 0 : index
      %c0_16 = arith.constant 0 : index
      %27 = vector.load %arg4[%c0_14, %c0_15, %c0_16] : memref<4x8x1xf32, #tpu.memory_space<vmem>>, vector<1x8x1xf32>
      %28 = vector.shape_cast %27 : vector<1x8x1xf32> to vector<8x1xf32>
      %29 = vector.broadcast %0 : vector<1x128xf32> to vector<8x128xf32>
      %30 = arith.mulf %29, %24 : vector<8x128xf32>
      %cst_17 = arith.constant dense<0.000000e+00> : vector<8xf32>
      %31 = vector.multi_reduction <add>, %30, %cst_17 [1] : vector<8x128xf32> to vector<8xf32>
      %32 = vector.shape_cast %31 : vector<8xf32> to vector<8x1xf32>
      %33 = arith.mulf %26, %24 : vector<8x128xf32>
      %cst_18 = arith.constant dense<0.000000e+00> : vector<8xf32>
      %34 = vector.multi_reduction <add>, %33, %cst_18 [1] : vector<8x128xf32> to vector<8xf32>
      %35 = vector.shape_cast %34 : vector<8xf32> to vector<8x1xf32>
      %36 = arith.mulf %35, %28 : vector<8x1xf32>
      %37 = arith.addf %32, %36 : vector<8x1xf32>
      %c0_19 = arith.constant 0 : index
      %c0_20 = arith.constant 0 : index
      %38 = vector.load %arg9[%c0_19, %c0_20] : memref<8x1xf32, #tpu.memory_space<vmem>>, vector<8x1xf32>
      tpu.vector_store %arg9[%c0_19, %c0_20], %37 {strides = array<i32>} : memref<8x1xf32, #tpu.memory_space<vmem>>, vector<8x1xf32>,
      %39 = vector.broadcast %0 : vector<1x128xf32> to vector<8x128xf32>
      %40 = arith.addf %39, %26 : vector<8x128xf32>
      %c0_21 = arith.constant 0 : index
      %c0_22 = arith.constant 0 : index
      %41 = vector.load %arg10[%c0_21, %c0_22] : memref<8x128xf32, #tpu.memory_space<vmem>>, vector<8x128xf32>
      tpu.vector_store %arg10[%c0_21, %c0_22], %40 {strides = array<i32>} : memref<8x128xf32, #tpu.memory_space<vmem>>, vector<8x128xf32>,
      %c0_23 = arith.constant 0 : index
      %c0_24 = arith.constant 0 : index
      %42 = vector.load %arg11[%c0_23, %c0_24] : memref<8x128xf32, #tpu.memory_space<vmem>>, vector<8x128xf32>
      tpu.vector_store %arg11[%c0_23, %c0_24], %24 {strides = array<i32>} : memref<8x128xf32, #tpu.memory_space<vmem>>, vector<8x128xf32>,
      %c0_25 = arith.constant 0 : index
      %c0_26 = arith.constant 0 : index
      %43 = vector.load %arg12[%c0_25, %c0_26] : memref<8x128xf32, #tpu.memory_space<vmem>>, vector<8x128xf32>
      tpu.vector_store %arg12[%c0_25, %c0_26], %24 {strides = array<i32>} : memref<8x128xf32, #tpu.memory_space<vmem>>, vector<8x128xf32>,
      %c1_i32_27 = arith.constant 1 : i32
      %44 = arith.index_cast %c1_i32_27 : i32 to index
      %c0_28 = arith.constant 0 : index
      %c0_29 = arith.constant 0 : index
      %45 = vector.load %arg3[%44, %c0_28, %c0_29] : memref<4x8x1xi32, #tpu.memory_space<vmem>>, vector<1x8x1xi32>
      %46 = vector.shape_cast %45 : vector<1x8x1xi32> to vector<8x1xi32>
      %47 = vector.broadcast %46 : vector<8x1xi32> to vector<8x128xi32>
      %48 = arith.cmpi eq, %9, %47 : vector<8x128xi32>
      %49 = arith.extui %48 : vector<8x128xi1> to vector<8x128xi32>
      %50 = arith.sitofp %49 : vector<8x128xi32> to vector<8x128xf32>
      %51 = arith.index_cast %c1_i32_27 : i32 to index
      %c0_30 = arith.constant 0 : index
      %c0_31 = arith.constant 0 : index
      %52 = vector.load %arg4[%51, %c0_30, %c0_31] : memref<4x8x1xf32, #tpu.memory_space<vmem>>, vector<1x8x1xf32>
      %53 = vector.shape_cast %52 : vector<1x8x1xf32> to vector<8x1xf32>
      %54 = arith.index_cast %c1_i32_27 : i32 to index
      %c0_32 = arith.constant 0 : index
      %c0_33 = arith.constant 0 : index
      %55 = vector.load %arg2[%54, %c0_32, %c0_33] : memref<4x8x128xf32, #tpu.memory_space<vmem>>, vector<1x8x128xf32>
      %56 = vector.shape_cast %55 : vector<1x8x128xf32> to vector<8x128xf32>
      %57 = arith.mulf %56, %50 : vector<8x128xf32>
      %cst_34 = arith.constant dense<0.000000e+00> : vector<8xf32>
      %58 = vector.multi_reduction <add>, %57, %cst_34 [1] : vector<8x128xf32> to vector<8xf32>
      %59 = vector.shape_cast %58 : vector<8xf32> to vector<8x1xf32>
      %c0_35 = arith.constant 0 : index
      %c0_36 = arith.constant 0 : index
      %60 = vector.load %arg12[%c0_35, %c0_36] : memref<8x128xf32, #tpu.memory_space<vmem>>, vector<8x128xf32>
      %cst_37 = arith.constant dense<0.000000e+00> : vector<8x128xf32>
      %61 = tpu.matmul %60, %1, %cst_37 {dimension_numbers = #tpu.dot_dimension_numbers<[1], [0], [0], [1], [0, 0, 1, 1], [], []>} : vector<8x128xf32>, vector<128x128xf32>, vector<8x128xf32> -> vector<8x128xf32>
      %62 = arith.mulf %61, %50 : vector<8x128xf32>
      %cst_38 = arith.constant dense<0.000000e+00> : vector<8xf32>
      %63 = vector.multi_reduction <add>, %62, %cst_38 [1] : vector<8x128xf32> to vector<8xf32>
      %64 = vector.shape_cast %63 : vector<8xf32> to vector<8x1xf32>
      %c0_39 = arith.constant 0 : index
      %c0_40 = arith.constant 0 : index
      %65 = vector.load %arg9[%c0_39, %c0_40] : memref<8x1xf32, #tpu.memory_space<vmem>>, vector<8x1xf32>
      %66 = arith.addf %59, %64 : vector<8x1xf32>
      %67 = arith.mulf %66, %53 : vector<8x1xf32>
      %68 = arith.addf %65, %67 : vector<8x1xf32>
      %c0_41 = arith.constant 0 : index
      %c0_42 = arith.constant 0 : index
      %69 = vector.load %arg9[%c0_41, %c0_42] : memref<8x1xf32, #tpu.memory_space<vmem>>, vector<8x1xf32>
      tpu.vector_store %arg9[%c0_41, %c0_42], %68 {strides = array<i32>} : memref<8x1xf32, #tpu.memory_space<vmem>>, vector<8x1xf32>,
      %cst_43 = arith.constant 0.000000e+00 : f32
      %70 = vector.broadcast %cst_43 : f32 to vector<8x1xf32>
      %71 = arith.cmpf ogt, %53, %70 : vector<8x1xf32>
      %c0_44 = arith.constant 0 : index
      %c0_45 = arith.constant 0 : index
      %72 = vector.load %arg11[%c0_44, %c0_45] : memref<8x128xf32, #tpu.memory_space<vmem>>, vector<8x128xf32>
      %73 = vector.shape_cast %71 : vector<8x1xi1> to vector<8x1xi1>
      %74 = vector.broadcast %73 : vector<8x1xi1> to vector<8x128xi1>
      %75 = arith.select %74, %50, %72 : vector<8x128xi1>, vector<8x128xf32>
      %c0_46 = arith.constant 0 : index
      %c0_47 = arith.constant 0 : index
      %76 = vector.load %arg11[%c0_46, %c0_47] : memref<8x128xf32, #tpu.memory_space<vmem>>, vector<8x128xf32>
      tpu.vector_store %arg11[%c0_46, %c0_47], %75 {strides = array<i32>} : memref<8x128xf32, #tpu.memory_space<vmem>>, vector<8x128xf32>,
      %c0_48 = arith.constant 0 : index
      %c0_49 = arith.constant 0 : index
      %77 = vector.load %arg12[%c0_48, %c0_49] : memref<8x128xf32, #tpu.memory_space<vmem>>, vector<8x128xf32>
      tpu.vector_store %arg12[%c0_48, %c0_49], %50 {strides = array<i32>} : memref<8x128xf32, #tpu.memory_space<vmem>>, vector<8x128xf32>,
      %c0_50 = arith.constant 0 : index
      %c0_51 = arith.constant 0 : index
      %78 = vector.load %arg10[%c0_50, %c0_51] : memref<8x128xf32, #tpu.memory_space<vmem>>, vector<8x128xf32>
      %cst_52 = arith.constant dense<0xFF800000> : vector<8xf32>
      %79 = vector.multi_reduction <maximumf>, %78, %cst_52 [1] : vector<8x128xf32> to vector<8xf32>
      %80 = vector.shape_cast %79 : vector<8xf32> to vector<8x1xf32>
      %81 = vector.broadcast %80 : vector<8x1xf32> to vector<8x128xf32>
      %82 = arith.subf %78, %81 : vector<8x128xf32>
      %83 = math.exp %82 : vector<8x128xf32>
      %cst_53 = arith.constant dense<0.000000e+00> : vector<8x128xf32>
      %84 = tpu.matmul %83, %8, %cst_53 {dimension_numbers = #tpu.dot_dimension_numbers<[1], [0], [0], [1], [0, 0, 1, 1], [], []>} : vector<8x128xf32>, vector<128x128xf32>, vector<8x128xf32> -> vector<8x128xf32>
      %85 = math.log %84 : vector<8x128xf32>
      %86 = vector.broadcast %80 : vector<8x1xf32> to vector<8x128xf32>
      %87 = arith.addf %85, %86 : vector<8x128xf32>
      %88 = vector.broadcast %5 : vector<1x1xf32> to vector<8x128xf32>
      %89 = arith.addf %87, %88 : vector<8x128xf32>
      %90 = arith.addf %89, %56 : vector<8x128xf32>
      %cst_54 = arith.constant 0.000000e+00 : f32
      %91 = vector.broadcast %cst_54 : f32 to vector<8x1xf32>
      %92 = arith.cmpf ogt, %53, %91 : vector<8x1xf32>
      %93 = vector.shape_cast %92 : vector<8x1xi1> to vector<8x1xi1>
      %94 = vector.broadcast %93 : vector<8x1xi1> to vector<8x128xi1>
      %95 = arith.select %94, %90, %78 : vector<8x128xi1>, vector<8x128xf32>
      %c0_55 = arith.constant 0 : index
      %c0_56 = arith.constant 0 : index
      %96 = vector.load %arg10[%c0_55, %c0_56] : memref<8x128xf32, #tpu.memory_space<vmem>>, vector<8x128xf32>
      tpu.vector_store %arg10[%c0_55, %c0_56], %95 {strides = array<i32>} : memref<8x128xf32, #tpu.memory_space<vmem>>, vector<8x128xf32>,
      %c2_i32 = arith.constant 2 : i32
      %97 = arith.index_cast %c2_i32 : i32 to index
      %c0_57 = arith.constant 0 : index
      %c0_58 = arith.constant 0 : index
      %98 = vector.load %arg3[%97, %c0_57, %c0_58] : memref<4x8x1xi32, #tpu.memory_space<vmem>>, vector<1x8x1xi32>
      %99 = vector.shape_cast %98 : vector<1x8x1xi32> to vector<8x1xi32>
      %100 = vector.broadcast %99 : vector<8x1xi32> to vector<8x128xi32>
      %101 = arith.cmpi eq, %9, %100 : vector<8x128xi32>
      %102 = arith.extui %101 : vector<8x128xi1> to vector<8x128xi32>
      %103 = arith.sitofp %102 : vector<8x128xi32> to vector<8x128xf32>
      %104 = arith.index_cast %c2_i32 : i32 to index
      %c0_59 = arith.constant 0 : index
      %c0_60 = arith.constant 0 : index
      %105 = vector.load %arg4[%104, %c0_59, %c0_60] : memref<4x8x1xf32, #tpu.memory_space<vmem>>, vector<1x8x1xf32>
      %106 = vector.shape_cast %105 : vector<1x8x1xf32> to vector<8x1xf32>
      %107 = arith.index_cast %c2_i32 : i32 to index
      %c0_61 = arith.constant 0 : index
      %c0_62 = arith.constant 0 : index
      %108 = vector.load %arg2[%107, %c0_61, %c0_62] : memref<4x8x128xf32, #tpu.memory_space<vmem>>, vector<1x8x128xf32>
      %109 = vector.shape_cast %108 : vector<1x8x128xf32> to vector<8x128xf32>
      %110 = arith.mulf %109, %103 : vector<8x128xf32>
      %cst_63 = arith.constant dense<0.000000e+00> : vector<8xf32>
      %111 = vector.multi_reduction <add>, %110, %cst_63 [1] : vector<8x128xf32> to vector<8xf32>
      %112 = vector.shape_cast %111 : vector<8xf32> to vector<8x1xf32>
      %c0_64 = arith.constant 0 : index
      %c0_65 = arith.constant 0 : index
      %113 = vector.load %arg12[%c0_64, %c0_65] : memref<8x128xf32, #tpu.memory_space<vmem>>, vector<8x128xf32>
      %cst_66 = arith.constant dense<0.000000e+00> : vector<8x128xf32>
      %114 = tpu.matmul %113, %1, %cst_66 {dimension_numbers = #tpu.dot_dimension_numbers<[1], [0], [0], [1], [0, 0, 1, 1], [], []>} : vector<8x128xf32>, vector<128x128xf32>, vector<8x128xf32> -> vector<8x128xf32>
      %115 = arith.mulf %114, %103 : vector<8x128xf32>
      %cst_67 = arith.constant dense<0.000000e+00> : vector<8xf32>
      %116 = vector.multi_reduction <add>, %115, %cst_67 [1] : vector<8x128xf32> to vector<8xf32>
      %117 = vector.shape_cast %116 : vector<8xf32> to vector<8x1xf32>
      %c0_68 = arith.constant 0 : index
      %c0_69 = arith.constant 0 : index
      %118 = vector.load %arg9[%c0_68, %c0_69] : memref<8x1xf32, #tpu.memory_space<vmem>>, vector<8x1xf32>
      %119 = arith.addf %112, %117 : vector<8x1xf32>
      %120 = arith.mulf %119, %106 : vector<8x1xf32>
      %121 = arith.addf %118, %120 : vector<8x1xf32>
      %c0_70 = arith.constant 0 : index
      %c0_71 = arith.constant 0 : index
      %122 = vector.load %arg9[%c0_70, %c0_71] : memref<8x1xf32, #tpu.memory_space<vmem>>, vector<8x1xf32>
      tpu.vector_store %arg9[%c0_70, %c0_71], %121 {strides = array<i32>} : memref<8x1xf32, #tpu.memory_space<vmem>>, vector<8x1xf32>,
      %cst_72 = arith.constant 0.000000e+00 : f32
      %123 = vector.broadcast %cst_72 : f32 to vector<8x1xf32>
      %124 = arith.cmpf ogt, %106, %123 : vector<8x1xf32>
      %c0_73 = arith.constant 0 : index
      %c0_74 = arith.constant 0 : index
      %125 = vector.load %arg11[%c0_73, %c0_74] : memref<8x128xf32, #tpu.memory_space<vmem>>, vector<8x128xf32>
      %126 = vector.shape_cast %124 : vector<8x1xi1> to vector<8x1xi1>
      %127 = vector.broadcast %126 : vector<8x1xi1> to vector<8x128xi1>
      %128 = arith.select %127, %103, %125 : vector<8x128xi1>, vector<8x128xf32>
      %c0_75 = arith.constant 0 : index
      %c0_76 = arith.constant 0 : index
      %129 = vector.load %arg11[%c0_75, %c0_76] : memref<8x128xf32, #tpu.memory_space<vmem>>, vector<8x128xf32>
      tpu.vector_store %arg11[%c0_75, %c0_76], %128 {strides = array<i32>} : memref<8x128xf32, #tpu.memory_space<vmem>>, vector<8x128xf32>,
      %c0_77 = arith.constant 0 : index
      %c0_78 = arith.constant 0 : index
      %130 = vector.load %arg12[%c0_77, %c0_78] : memref<8x128xf32, #tpu.memory_space<vmem>>, vector<8x128xf32>
      tpu.vector_store %arg12[%c0_77, %c0_78], %103 {strides = array<i32>} : memref<8x128xf32, #tpu.memory_space<vmem>>, vector<8x128xf32>,
      %c0_79 = arith.constant 0 : index
      %c0_80 = arith.constant 0 : index
      %131 = vector.load %arg10[%c0_79, %c0_80] : memref<8x128xf32, #tpu.memory_space<vmem>>, vector<8x128xf32>
      %cst_81 = arith.constant dense<0xFF800000> : vector<8xf32>
      %132 = vector.multi_reduction <maximumf>, %131, %cst_81 [1] : vector<8x128xf32> to vector<8xf32>
      %133 = vector.shape_cast %132 : vector<8xf32> to vector<8x1xf32>
      %134 = vector.broadcast %133 : vector<8x1xf32> to vector<8x128xf32>
      %135 = arith.subf %131, %134 : vector<8x128xf32>
      %136 = math.exp %135 : vector<8x128xf32>
      %cst_82 = arith.constant dense<0.000000e+00> : vector<8x128xf32>
      %137 = tpu.matmul %136, %8, %cst_82 {dimension_numbers = #tpu.dot_dimension_numbers<[1], [0], [0], [1], [0, 0, 1, 1], [], []>} : vector<8x128xf32>, vector<128x128xf32>, vector<8x128xf32> -> vector<8x128xf32>
      %138 = math.log %137 : vector<8x128xf32>
      %139 = vector.broadcast %133 : vector<8x1xf32> to vector<8x128xf32>
      %140 = arith.addf %138, %139 : vector<8x128xf32>
      %141 = vector.broadcast %5 : vector<1x1xf32> to vector<8x128xf32>
      %142 = arith.addf %140, %141 : vector<8x128xf32>
      %143 = arith.addf %142, %109 : vector<8x128xf32>
      %cst_83 = arith.constant 0.000000e+00 : f32
      %144 = vector.broadcast %cst_83 : f32 to vector<8x1xf32>
      %145 = arith.cmpf ogt, %106, %144 : vector<8x1xf32>
      %146 = vector.shape_cast %145 : vector<8x1xi1> to vector<8x1xi1>
      %147 = vector.broadcast %146 : vector<8x1xi1> to vector<8x128xi1>
      %148 = arith.select %147, %143, %131 : vector<8x128xi1>, vector<8x128xf32>
      %c0_84 = arith.constant 0 : index
      %c0_85 = arith.constant 0 : index
      %149 = vector.load %arg10[%c0_84, %c0_85] : memref<8x128xf32, #tpu.memory_space<vmem>>, vector<8x128xf32>
      tpu.vector_store %arg10[%c0_84, %c0_85], %148 {strides = array<i32>} : memref<8x128xf32, #tpu.memory_space<vmem>>, vector<8x128xf32>,
      %c3_i32 = arith.constant 3 : i32
      %150 = arith.index_cast %c3_i32 : i32 to index
      %c0_86 = arith.constant 0 : index
      %c0_87 = arith.constant 0 : index
      %151 = vector.load %arg3[%150, %c0_86, %c0_87] : memref<4x8x1xi32, #tpu.memory_space<vmem>>, vector<1x8x1xi32>
      %152 = vector.shape_cast %151 : vector<1x8x1xi32> to vector<8x1xi32>
      %153 = vector.broadcast %152 : vector<8x1xi32> to vector<8x128xi32>
      %154 = arith.cmpi eq, %9, %153 : vector<8x128xi32>
      %155 = arith.extui %154 : vector<8x128xi1> to vector<8x128xi32>
      %156 = arith.sitofp %155 : vector<8x128xi32> to vector<8x128xf32>
      %157 = arith.index_cast %c3_i32 : i32 to index
      %c0_88 = arith.constant 0 : index
      %c0_89 = arith.constant 0 : index
      %158 = vector.load %arg4[%157, %c0_88, %c0_89] : memref<4x8x1xf32, #tpu.memory_space<vmem>>, vector<1x8x1xf32>
      %159 = vector.shape_cast %158 : vector<1x8x1xf32> to vector<8x1xf32>
      %160 = arith.index_cast %c3_i32 : i32 to index
      %c0_90 = arith.constant 0 : index
      %c0_91 = arith.constant 0 : index
      %161 = vector.load %arg2[%160, %c0_90, %c0_91] : memref<4x8x128xf32, #tpu.memory_space<vmem>>, vector<1x8x128xf32>
      %162 = vector.shape_cast %161 : vector<1x8x128xf32> to vector<8x128xf32>
      %163 = arith.mulf %162, %156 : vector<8x128xf32>
      %cst_92 = arith.constant dense<0.000000e+00> : vector<8xf32>
      %164 = vector.multi_reduction <add>, %163, %cst_92 [1] : vector<8x128xf32> to vector<8xf32>
      %165 = vector.shape_cast %164 : vector<8xf32> to vector<8x1xf32>
      %c0_93 = arith.constant 0 : index
      %c0_94 = arith.constant 0 : index
      %166 = vector.load %arg12[%c0_93, %c0_94] : memref<8x128xf32, #tpu.memory_space<vmem>>, vector<8x128xf32>
      %cst_95 = arith.constant dense<0.000000e+00> : vector<8x128xf32>
      %167 = tpu.matmul %166, %1, %cst_95 {dimension_numbers = #tpu.dot_dimension_numbers<[1], [0], [0], [1], [0, 0, 1, 1], [], []>} : vector<8x128xf32>, vector<128x128xf32>, vector<8x128xf32> -> vector<8x128xf32>
      %168 = arith.mulf %167, %156 : vector<8x128xf32>
      %cst_96 = arith.constant dense<0.000000e+00> : vector<8xf32>
      %169 = vector.multi_reduction <add>, %168, %cst_96 [1] : vector<8x128xf32> to vector<8xf32>
      %170 = vector.shape_cast %169 : vector<8xf32> to vector<8x1xf32>
      %c0_97 = arith.constant 0 : index
      %c0_98 = arith.constant 0 : index
      %171 = vector.load %arg9[%c0_97, %c0_98] : memref<8x1xf32, #tpu.memory_space<vmem>>, vector<8x1xf32>
      %172 = arith.addf %165, %170 : vector<8x1xf32>
      %173 = arith.mulf %172, %159 : vector<8x1xf32>
      %174 = arith.addf %171, %173 : vector<8x1xf32>
      %c0_99 = arith.constant 0 : index
      %c0_100 = arith.constant 0 : index
      %175 = vector.load %arg9[%c0_99, %c0_100] : memref<8x1xf32, #tpu.memory_space<vmem>>, vector<8x1xf32>
      tpu.vector_store %arg9[%c0_99, %c0_100], %174 {strides = array<i32>} : memref<8x1xf32, #tpu.memory_space<vmem>>, vector<8x1xf32>,
      %cst_101 = arith.constant 0.000000e+00 : f32
      %176 = vector.broadcast %cst_101 : f32 to vector<8x1xf32>
      %177 = arith.cmpf ogt, %159, %176 : vector<8x1xf32>
      %c0_102 = arith.constant 0 : index
      %c0_103 = arith.constant 0 : index
      %178 = vector.load %arg11[%c0_102, %c0_103] : memref<8x128xf32, #tpu.memory_space<vmem>>, vector<8x128xf32>
      %179 = vector.shape_cast %177 : vector<8x1xi1> to vector<8x1xi1>
      %180 = vector.broadcast %179 : vector<8x1xi1> to vector<8x128xi1>
      %181 = arith.select %180, %156, %178 : vector<8x128xi1>, vector<8x128xf32>
      %c0_104 = arith.constant 0 : index
      %c0_105 = arith.constant 0 : index
      %182 = vector.load %arg11[%c0_104, %c0_105] : memref<8x128xf32, #tpu.memory_space<vmem>>, vector<8x128xf32>
      tpu.vector_store %arg11[%c0_104, %c0_105], %181 {strides = array<i32>} : memref<8x128xf32, #tpu.memory_space<vmem>>, vector<8x128xf32>,
      %c0_106 = arith.constant 0 : index
      %c0_107 = arith.constant 0 : index
      %183 = vector.load %arg12[%c0_106, %c0_107] : memref<8x128xf32, #tpu.memory_space<vmem>>, vector<8x128xf32>
      tpu.vector_store %arg12[%c0_106, %c0_107], %156 {strides = array<i32>} : memref<8x128xf32, #tpu.memory_space<vmem>>, vector<8x128xf32>,
      %c0_108 = arith.constant 0 : index
      %c0_109 = arith.constant 0 : index
      %184 = vector.load %arg10[%c0_108, %c0_109] : memref<8x128xf32, #tpu.memory_space<vmem>>, vector<8x128xf32>
      %cst_110 = arith.constant dense<0xFF800000> : vector<8xf32>
      %185 = vector.multi_reduction <maximumf>, %184, %cst_110 [1] : vector<8x128xf32> to vector<8xf32>
      %186 = vector.shape_cast %185 : vector<8xf32> to vector<8x1xf32>
      %187 = vector.broadcast %186 : vector<8x1xf32> to vector<8x128xf32>
      %188 = arith.subf %184, %187 : vector<8x128xf32>
      %189 = math.exp %188 : vector<8x128xf32>
      %cst_111 = arith.constant dense<0.000000e+00> : vector<8x128xf32>
      %190 = tpu.matmul %189, %8, %cst_111 {dimension_numbers = #tpu.dot_dimension_numbers<[1], [0], [0], [1], [0, 0, 1, 1], [], []>} : vector<8x128xf32>, vector<128x128xf32>, vector<8x128xf32> -> vector<8x128xf32>
      %191 = math.log %190 : vector<8x128xf32>
      %192 = vector.broadcast %186 : vector<8x1xf32> to vector<8x128xf32>
      %193 = arith.addf %191, %192 : vector<8x128xf32>
      %194 = vector.broadcast %5 : vector<1x1xf32> to vector<8x128xf32>
      %195 = arith.addf %193, %194 : vector<8x128xf32>
      %196 = arith.addf %195, %162 : vector<8x128xf32>
      %cst_112 = arith.constant 0.000000e+00 : f32
      %197 = vector.broadcast %cst_112 : f32 to vector<8x1xf32>
      %198 = arith.cmpf ogt, %159, %197 : vector<8x1xf32>
      %199 = vector.shape_cast %198 : vector<8x1xi1> to vector<8x1xi1>
      %200 = vector.broadcast %199 : vector<8x1xi1> to vector<8x128xi1>
      %201 = arith.select %200, %196, %184 : vector<8x128xi1>, vector<8x128xf32>
      %c0_113 = arith.constant 0 : index
      %c0_114 = arith.constant 0 : index
      %202 = vector.load %arg10[%c0_113, %c0_114] : memref<8x128xf32, #tpu.memory_space<vmem>>, vector<8x128xf32>
      tpu.vector_store %arg10[%c0_113, %c0_114], %201 {strides = array<i32>} : memref<8x128xf32, #tpu.memory_space<vmem>>, vector<8x128xf32>,
      %c3_i32_115 = arith.constant 3 : i32
    } else {
    }
    %c0_i32_5 = arith.constant 0 : i32
    %13 = arith.cmpi sgt, %arg1, %c0_i32_5 : i32
    %14 = arith.extui %13 : i1 to i32
    %c0_i32_6 = arith.constant 0 : i32
    %15 = arith.cmpi ne, %14, %c0_i32_6 : i32
    scf.if %15 {
      %c0_i32_8 = arith.constant 0 : i32
      %19 = arith.index_cast %c0_i32_8 : i32 to index
      %c0_9 = arith.constant 0 : index
      %c0_10 = arith.constant 0 : index
      %20 = vector.load %arg3[%19, %c0_9, %c0_10] : memref<4x8x1xi32, #tpu.memory_space<vmem>>, vector<1x8x1xi32>
      %21 = vector.shape_cast %20 : vector<1x8x1xi32> to vector<8x1xi32>
      %22 = vector.broadcast %21 : vector<8x1xi32> to vector<8x128xi32>
      %23 = arith.cmpi eq, %9, %22 : vector<8x128xi32>
      %24 = arith.extui %23 : vector<8x128xi1> to vector<8x128xi32>
      %25 = arith.sitofp %24 : vector<8x128xi32> to vector<8x128xf32>
      %26 = arith.index_cast %c0_i32_8 : i32 to index
      %c0_11 = arith.constant 0 : index
      %c0_12 = arith.constant 0 : index
      %27 = vector.load %arg4[%26, %c0_11, %c0_12] : memref<4x8x1xf32, #tpu.memory_space<vmem>>, vector<1x8x1xf32>
      %28 = vector.shape_cast %27 : vector<1x8x1xf32> to vector<8x1xf32>
      %29 = arith.index_cast %c0_i32_8 : i32 to index
      %c0_13 = arith.constant 0 : index
      %c0_14 = arith.constant 0 : index
      %30 = vector.load %arg2[%29, %c0_13, %c0_14] : memref<4x8x128xf32, #tpu.memory_space<vmem>>, vector<1x8x128xf32>
      %31 = vector.shape_cast %30 : vector<1x8x128xf32> to vector<8x128xf32>
      %32 = arith.mulf %31, %25 : vector<8x128xf32>
      %cst_15 = arith.constant dense<0.000000e+00> : vector<8xf32>
      %33 = vector.multi_reduction <add>, %32, %cst_15 [1] : vector<8x128xf32> to vector<8xf32>
      %34 = vector.shape_cast %33 : vector<8xf32> to vector<8x1xf32>
      %c0_16 = arith.constant 0 : index
      %c0_17 = arith.constant 0 : index
      %35 = vector.load %arg12[%c0_16, %c0_17] : memref<8x128xf32, #tpu.memory_space<vmem>>, vector<8x128xf32>
      %cst_18 = arith.constant dense<0.000000e+00> : vector<8x128xf32>
      %36 = tpu.matmul %35, %1, %cst_18 {dimension_numbers = #tpu.dot_dimension_numbers<[1], [0], [0], [1], [0, 0, 1, 1], [], []>} : vector<8x128xf32>, vector<128x128xf32>, vector<8x128xf32> -> vector<8x128xf32>
      %37 = arith.mulf %36, %25 : vector<8x128xf32>
      %cst_19 = arith.constant dense<0.000000e+00> : vector<8xf32>
      %38 = vector.multi_reduction <add>, %37, %cst_19 [1] : vector<8x128xf32> to vector<8xf32>
      %39 = vector.shape_cast %38 : vector<8xf32> to vector<8x1xf32>
      %c0_20 = arith.constant 0 : index
      %c0_21 = arith.constant 0 : index
      %40 = vector.load %arg9[%c0_20, %c0_21] : memref<8x1xf32, #tpu.memory_space<vmem>>, vector<8x1xf32>
      %41 = arith.addf %34, %39 : vector<8x1xf32>
      %42 = arith.mulf %41, %28 : vector<8x1xf32>
      %43 = arith.addf %40, %42 : vector<8x1xf32>
      %c0_22 = arith.constant 0 : index
      %c0_23 = arith.constant 0 : index
      %44 = vector.load %arg9[%c0_22, %c0_23] : memref<8x1xf32, #tpu.memory_space<vmem>>, vector<8x1xf32>
      tpu.vector_store %arg9[%c0_22, %c0_23], %43 {strides = array<i32>} : memref<8x1xf32, #tpu.memory_space<vmem>>, vector<8x1xf32>,
      %cst_24 = arith.constant 0.000000e+00 : f32
      %45 = vector.broadcast %cst_24 : f32 to vector<8x1xf32>
      %46 = arith.cmpf ogt, %28, %45 : vector<8x1xf32>
      %c0_25 = arith.constant 0 : index
      %c0_26 = arith.constant 0 : index
      %47 = vector.load %arg11[%c0_25, %c0_26] : memref<8x128xf32, #tpu.memory_space<vmem>>, vector<8x128xf32>
      %48 = vector.shape_cast %46 : vector<8x1xi1> to vector<8x1xi1>
      %49 = vector.broadcast %48 : vector<8x1xi1> to vector<8x128xi1>
      %50 = arith.select %49, %25, %47 : vector<8x128xi1>, vector<8x128xf32>
      %c0_27 = arith.constant 0 : index
      %c0_28 = arith.constant 0 : index
      %51 = vector.load %arg11[%c0_27, %c0_28] : memref<8x128xf32, #tpu.memory_space<vmem>>, vector<8x128xf32>
      tpu.vector_store %arg11[%c0_27, %c0_28], %50 {strides = array<i32>} : memref<8x128xf32, #tpu.memory_space<vmem>>, vector<8x128xf32>,
      %c0_29 = arith.constant 0 : index
      %c0_30 = arith.constant 0 : index
      %52 = vector.load %arg12[%c0_29, %c0_30] : memref<8x128xf32, #tpu.memory_space<vmem>>, vector<8x128xf32>
      tpu.vector_store %arg12[%c0_29, %c0_30], %25 {strides = array<i32>} : memref<8x128xf32, #tpu.memory_space<vmem>>, vector<8x128xf32>,
      %c0_31 = arith.constant 0 : index
      %c0_32 = arith.constant 0 : index
      %53 = vector.load %arg10[%c0_31, %c0_32] : memref<8x128xf32, #tpu.memory_space<vmem>>, vector<8x128xf32>
      %cst_33 = arith.constant dense<0xFF800000> : vector<8xf32>
      %54 = vector.multi_reduction <maximumf>, %53, %cst_33 [1] : vector<8x128xf32> to vector<8xf32>
      %55 = vector.shape_cast %54 : vector<8xf32> to vector<8x1xf32>
      %56 = vector.broadcast %55 : vector<8x1xf32> to vector<8x128xf32>
      %57 = arith.subf %53, %56 : vector<8x128xf32>
      %58 = math.exp %57 : vector<8x128xf32>
      %cst_34 = arith.constant dense<0.000000e+00> : vector<8x128xf32>
      %59 = tpu.matmul %58, %8, %cst_34 {dimension_numbers = #tpu.dot_dimension_numbers<[1], [0], [0], [1], [0, 0, 1, 1], [], []>} : vector<8x128xf32>, vector<128x128xf32>, vector<8x128xf32> -> vector<8x128xf32>
      %60 = math.log %59 : vector<8x128xf32>
      %61 = vector.broadcast %55 : vector<8x1xf32> to vector<8x128xf32>
      %62 = arith.addf %60, %61 : vector<8x128xf32>
      %63 = vector.broadcast %5 : vector<1x1xf32> to vector<8x128xf32>
      %64 = arith.addf %62, %63 : vector<8x128xf32>
      %65 = arith.addf %64, %31 : vector<8x128xf32>
      %cst_35 = arith.constant 0.000000e+00 : f32
      %66 = vector.broadcast %cst_35 : f32 to vector<8x1xf32>
      %67 = arith.cmpf ogt, %28, %66 : vector<8x1xf32>
      %68 = vector.shape_cast %67 : vector<8x1xi1> to vector<8x1xi1>
      %69 = vector.broadcast %68 : vector<8x1xi1> to vector<8x128xi1>
      %70 = arith.select %69, %65, %53 : vector<8x128xi1>, vector<8x128xf32>
      %c0_36 = arith.constant 0 : index
      %c0_37 = arith.constant 0 : index
      %71 = vector.load %arg10[%c0_36, %c0_37] : memref<8x128xf32, #tpu.memory_space<vmem>>, vector<8x128xf32>
      tpu.vector_store %arg10[%c0_36, %c0_37], %70 {strides = array<i32>} : memref<8x128xf32, #tpu.memory_space<vmem>>, vector<8x128xf32>,
      %c1_i32_38 = arith.constant 1 : i32
      %72 = arith.index_cast %c1_i32_38 : i32 to index
      %c0_39 = arith.constant 0 : index
      %c0_40 = arith.constant 0 : index
      %73 = vector.load %arg3[%72, %c0_39, %c0_40] : memref<4x8x1xi32, #tpu.memory_space<vmem>>, vector<1x8x1xi32>
      %74 = vector.shape_cast %73 : vector<1x8x1xi32> to vector<8x1xi32>
      %75 = vector.broadcast %74 : vector<8x1xi32> to vector<8x128xi32>
      %76 = arith.cmpi eq, %9, %75 : vector<8x128xi32>
      %77 = arith.extui %76 : vector<8x128xi1> to vector<8x128xi32>
      %78 = arith.sitofp %77 : vector<8x128xi32> to vector<8x128xf32>
      %79 = arith.index_cast %c1_i32_38 : i32 to index
      %c0_41 = arith.constant 0 : index
      %c0_42 = arith.constant 0 : index
      %80 = vector.load %arg4[%79, %c0_41, %c0_42] : memref<4x8x1xf32, #tpu.memory_space<vmem>>, vector<1x8x1xf32>
      %81 = vector.shape_cast %80 : vector<1x8x1xf32> to vector<8x1xf32>
      %82 = arith.index_cast %c1_i32_38 : i32 to index
      %c0_43 = arith.constant 0 : index
      %c0_44 = arith.constant 0 : index
      %83 = vector.load %arg2[%82, %c0_43, %c0_44] : memref<4x8x128xf32, #tpu.memory_space<vmem>>, vector<1x8x128xf32>
      %84 = vector.shape_cast %83 : vector<1x8x128xf32> to vector<8x128xf32>
      %85 = arith.mulf %84, %78 : vector<8x128xf32>
      %cst_45 = arith.constant dense<0.000000e+00> : vector<8xf32>
      %86 = vector.multi_reduction <add>, %85, %cst_45 [1] : vector<8x128xf32> to vector<8xf32>
      %87 = vector.shape_cast %86 : vector<8xf32> to vector<8x1xf32>
      %c0_46 = arith.constant 0 : index
      %c0_47 = arith.constant 0 : index
      %88 = vector.load %arg12[%c0_46, %c0_47] : memref<8x128xf32, #tpu.memory_space<vmem>>, vector<8x128xf32>
      %cst_48 = arith.constant dense<0.000000e+00> : vector<8x128xf32>
      %89 = tpu.matmul %88, %1, %cst_48 {dimension_numbers = #tpu.dot_dimension_numbers<[1], [0], [0], [1], [0, 0, 1, 1], [], []>} : vector<8x128xf32>, vector<128x128xf32>, vector<8x128xf32> -> vector<8x128xf32>
      %90 = arith.mulf %89, %78 : vector<8x128xf32>
      %cst_49 = arith.constant dense<0.000000e+00> : vector<8xf32>
      %91 = vector.multi_reduction <add>, %90, %cst_49 [1] : vector<8x128xf32> to vector<8xf32>
      %92 = vector.shape_cast %91 : vector<8xf32> to vector<8x1xf32>
      %c0_50 = arith.constant 0 : index
      %c0_51 = arith.constant 0 : index
      %93 = vector.load %arg9[%c0_50, %c0_51] : memref<8x1xf32, #tpu.memory_space<vmem>>, vector<8x1xf32>
      %94 = arith.addf %87, %92 : vector<8x1xf32>
      %95 = arith.mulf %94, %81 : vector<8x1xf32>
      %96 = arith.addf %93, %95 : vector<8x1xf32>
      %c0_52 = arith.constant 0 : index
      %c0_53 = arith.constant 0 : index
      %97 = vector.load %arg9[%c0_52, %c0_53] : memref<8x1xf32, #tpu.memory_space<vmem>>, vector<8x1xf32>
      tpu.vector_store %arg9[%c0_52, %c0_53], %96 {strides = array<i32>} : memref<8x1xf32, #tpu.memory_space<vmem>>, vector<8x1xf32>,
      %cst_54 = arith.constant 0.000000e+00 : f32
      %98 = vector.broadcast %cst_54 : f32 to vector<8x1xf32>
      %99 = arith.cmpf ogt, %81, %98 : vector<8x1xf32>
      %c0_55 = arith.constant 0 : index
      %c0_56 = arith.constant 0 : index
      %100 = vector.load %arg11[%c0_55, %c0_56] : memref<8x128xf32, #tpu.memory_space<vmem>>, vector<8x128xf32>
      %101 = vector.shape_cast %99 : vector<8x1xi1> to vector<8x1xi1>
      %102 = vector.broadcast %101 : vector<8x1xi1> to vector<8x128xi1>
      %103 = arith.select %102, %78, %100 : vector<8x128xi1>, vector<8x128xf32>
      %c0_57 = arith.constant 0 : index
      %c0_58 = arith.constant 0 : index
      %104 = vector.load %arg11[%c0_57, %c0_58] : memref<8x128xf32, #tpu.memory_space<vmem>>, vector<8x128xf32>
      tpu.vector_store %arg11[%c0_57, %c0_58], %103 {strides = array<i32>} : memref<8x128xf32, #tpu.memory_space<vmem>>, vector<8x128xf32>,
      %c0_59 = arith.constant 0 : index
      %c0_60 = arith.constant 0 : index
      %105 = vector.load %arg12[%c0_59, %c0_60] : memref<8x128xf32, #tpu.memory_space<vmem>>, vector<8x128xf32>
      tpu.vector_store %arg12[%c0_59, %c0_60], %78 {strides = array<i32>} : memref<8x128xf32, #tpu.memory_space<vmem>>, vector<8x128xf32>,
      %c0_61 = arith.constant 0 : index
      %c0_62 = arith.constant 0 : index
      %106 = vector.load %arg10[%c0_61, %c0_62] : memref<8x128xf32, #tpu.memory_space<vmem>>, vector<8x128xf32>
      %cst_63 = arith.constant dense<0xFF800000> : vector<8xf32>
      %107 = vector.multi_reduction <maximumf>, %106, %cst_63 [1] : vector<8x128xf32> to vector<8xf32>
      %108 = vector.shape_cast %107 : vector<8xf32> to vector<8x1xf32>
      %109 = vector.broadcast %108 : vector<8x1xf32> to vector<8x128xf32>
      %110 = arith.subf %106, %109 : vector<8x128xf32>
      %111 = math.exp %110 : vector<8x128xf32>
      %cst_64 = arith.constant dense<0.000000e+00> : vector<8x128xf32>
      %112 = tpu.matmul %111, %8, %cst_64 {dimension_numbers = #tpu.dot_dimension_numbers<[1], [0], [0], [1], [0, 0, 1, 1], [], []>} : vector<8x128xf32>, vector<128x128xf32>, vector<8x128xf32> -> vector<8x128xf32>
      %113 = math.log %112 : vector<8x128xf32>
      %114 = vector.broadcast %108 : vector<8x1xf32> to vector<8x128xf32>
      %115 = arith.addf %113, %114 : vector<8x128xf32>
      %116 = vector.broadcast %5 : vector<1x1xf32> to vector<8x128xf32>
      %117 = arith.addf %115, %116 : vector<8x128xf32>
      %118 = arith.addf %117, %84 : vector<8x128xf32>
      %cst_65 = arith.constant 0.000000e+00 : f32
      %119 = vector.broadcast %cst_65 : f32 to vector<8x1xf32>
      %120 = arith.cmpf ogt, %81, %119 : vector<8x1xf32>
      %121 = vector.shape_cast %120 : vector<8x1xi1> to vector<8x1xi1>
      %122 = vector.broadcast %121 : vector<8x1xi1> to vector<8x128xi1>
      %123 = arith.select %122, %118, %106 : vector<8x128xi1>, vector<8x128xf32>
      %c0_66 = arith.constant 0 : index
      %c0_67 = arith.constant 0 : index
      %124 = vector.load %arg10[%c0_66, %c0_67] : memref<8x128xf32, #tpu.memory_space<vmem>>, vector<8x128xf32>
      tpu.vector_store %arg10[%c0_66, %c0_67], %123 {strides = array<i32>} : memref<8x128xf32, #tpu.memory_space<vmem>>, vector<8x128xf32>,
      %c2_i32 = arith.constant 2 : i32
      %125 = arith.index_cast %c2_i32 : i32 to index
      %c0_68 = arith.constant 0 : index
      %c0_69 = arith.constant 0 : index
      %126 = vector.load %arg3[%125, %c0_68, %c0_69] : memref<4x8x1xi32, #tpu.memory_space<vmem>>, vector<1x8x1xi32>
      %127 = vector.shape_cast %126 : vector<1x8x1xi32> to vector<8x1xi32>
      %128 = vector.broadcast %127 : vector<8x1xi32> to vector<8x128xi32>
      %129 = arith.cmpi eq, %9, %128 : vector<8x128xi32>
      %130 = arith.extui %129 : vector<8x128xi1> to vector<8x128xi32>
      %131 = arith.sitofp %130 : vector<8x128xi32> to vector<8x128xf32>
      %132 = arith.index_cast %c2_i32 : i32 to index
      %c0_70 = arith.constant 0 : index
      %c0_71 = arith.constant 0 : index
      %133 = vector.load %arg4[%132, %c0_70, %c0_71] : memref<4x8x1xf32, #tpu.memory_space<vmem>>, vector<1x8x1xf32>
      %134 = vector.shape_cast %133 : vector<1x8x1xf32> to vector<8x1xf32>
      %135 = arith.index_cast %c2_i32 : i32 to index
      %c0_72 = arith.constant 0 : index
      %c0_73 = arith.constant 0 : index
      %136 = vector.load %arg2[%135, %c0_72, %c0_73] : memref<4x8x128xf32, #tpu.memory_space<vmem>>, vector<1x8x128xf32>
      %137 = vector.shape_cast %136 : vector<1x8x128xf32> to vector<8x128xf32>
      %138 = arith.mulf %137, %131 : vector<8x128xf32>
      %cst_74 = arith.constant dense<0.000000e+00> : vector<8xf32>
      %139 = vector.multi_reduction <add>, %138, %cst_74 [1] : vector<8x128xf32> to vector<8xf32>
      %140 = vector.shape_cast %139 : vector<8xf32> to vector<8x1xf32>
      %c0_75 = arith.constant 0 : index
      %c0_76 = arith.constant 0 : index
      %141 = vector.load %arg12[%c0_75, %c0_76] : memref<8x128xf32, #tpu.memory_space<vmem>>, vector<8x128xf32>
      %cst_77 = arith.constant dense<0.000000e+00> : vector<8x128xf32>
      %142 = tpu.matmul %141, %1, %cst_77 {dimension_numbers = #tpu.dot_dimension_numbers<[1], [0], [0], [1], [0, 0, 1, 1], [], []>} : vector<8x128xf32>, vector<128x128xf32>, vector<8x128xf32> -> vector<8x128xf32>
      %143 = arith.mulf %142, %131 : vector<8x128xf32>
      %cst_78 = arith.constant dense<0.000000e+00> : vector<8xf32>
      %144 = vector.multi_reduction <add>, %143, %cst_78 [1] : vector<8x128xf32> to vector<8xf32>
      %145 = vector.shape_cast %144 : vector<8xf32> to vector<8x1xf32>
      %c0_79 = arith.constant 0 : index
      %c0_80 = arith.constant 0 : index
      %146 = vector.load %arg9[%c0_79, %c0_80] : memref<8x1xf32, #tpu.memory_space<vmem>>, vector<8x1xf32>
      %147 = arith.addf %140, %145 : vector<8x1xf32>
      %148 = arith.mulf %147, %134 : vector<8x1xf32>
      %149 = arith.addf %146, %148 : vector<8x1xf32>
      %c0_81 = arith.constant 0 : index
      %c0_82 = arith.constant 0 : index
      %150 = vector.load %arg9[%c0_81, %c0_82] : memref<8x1xf32, #tpu.memory_space<vmem>>, vector<8x1xf32>
      tpu.vector_store %arg9[%c0_81, %c0_82], %149 {strides = array<i32>} : memref<8x1xf32, #tpu.memory_space<vmem>>, vector<8x1xf32>,
      %cst_83 = arith.constant 0.000000e+00 : f32
      %151 = vector.broadcast %cst_83 : f32 to vector<8x1xf32>
      %152 = arith.cmpf ogt, %134, %151 : vector<8x1xf32>
      %c0_84 = arith.constant 0 : index
      %c0_85 = arith.constant 0 : index
      %153 = vector.load %arg11[%c0_84, %c0_85] : memref<8x128xf32, #tpu.memory_space<vmem>>, vector<8x128xf32>
      %154 = vector.shape_cast %152 : vector<8x1xi1> to vector<8x1xi1>
      %155 = vector.broadcast %154 : vector<8x1xi1> to vector<8x128xi1>
      %156 = arith.select %155, %131, %153 : vector<8x128xi1>, vector<8x128xf32>
      %c0_86 = arith.constant 0 : index
      %c0_87 = arith.constant 0 : index
      %157 = vector.load %arg11[%c0_86, %c0_87] : memref<8x128xf32, #tpu.memory_space<vmem>>, vector<8x128xf32>
      tpu.vector_store %arg11[%c0_86, %c0_87], %156 {strides = array<i32>} : memref<8x128xf32, #tpu.memory_space<vmem>>, vector<8x128xf32>,
      %c0_88 = arith.constant 0 : index
      %c0_89 = arith.constant 0 : index
      %158 = vector.load %arg12[%c0_88, %c0_89] : memref<8x128xf32, #tpu.memory_space<vmem>>, vector<8x128xf32>
      tpu.vector_store %arg12[%c0_88, %c0_89], %131 {strides = array<i32>} : memref<8x128xf32, #tpu.memory_space<vmem>>, vector<8x128xf32>,
      %c0_90 = arith.constant 0 : index
      %c0_91 = arith.constant 0 : index
      %159 = vector.load %arg10[%c0_90, %c0_91] : memref<8x128xf32, #tpu.memory_space<vmem>>, vector<8x128xf32>
      %cst_92 = arith.constant dense<0xFF800000> : vector<8xf32>
      %160 = vector.multi_reduction <maximumf>, %159, %cst_92 [1] : vector<8x128xf32> to vector<8xf32>
      %161 = vector.shape_cast %160 : vector<8xf32> to vector<8x1xf32>
      %162 = vector.broadcast %161 : vector<8x1xf32> to vector<8x128xf32>
      %163 = arith.subf %159, %162 : vector<8x128xf32>
      %164 = math.exp %163 : vector<8x128xf32>
      %cst_93 = arith.constant dense<0.000000e+00> : vector<8x128xf32>
      %165 = tpu.matmul %164, %8, %cst_93 {dimension_numbers = #tpu.dot_dimension_numbers<[1], [0], [0], [1], [0, 0, 1, 1], [], []>} : vector<8x128xf32>, vector<128x128xf32>, vector<8x128xf32> -> vector<8x128xf32>
      %166 = math.log %165 : vector<8x128xf32>
      %167 = vector.broadcast %161 : vector<8x1xf32> to vector<8x128xf32>
      %168 = arith.addf %166, %167 : vector<8x128xf32>
      %169 = vector.broadcast %5 : vector<1x1xf32> to vector<8x128xf32>
      %170 = arith.addf %168, %169 : vector<8x128xf32>
      %171 = arith.addf %170, %137 : vector<8x128xf32>
      %cst_94 = arith.constant 0.000000e+00 : f32
      %172 = vector.broadcast %cst_94 : f32 to vector<8x1xf32>
      %173 = arith.cmpf ogt, %134, %172 : vector<8x1xf32>
      %174 = vector.shape_cast %173 : vector<8x1xi1> to vector<8x1xi1>
      %175 = vector.broadcast %174 : vector<8x1xi1> to vector<8x128xi1>
      %176 = arith.select %175, %171, %159 : vector<8x128xi1>, vector<8x128xf32>
      %c0_95 = arith.constant 0 : index
      %c0_96 = arith.constant 0 : index
      %177 = vector.load %arg10[%c0_95, %c0_96] : memref<8x128xf32, #tpu.memory_space<vmem>>, vector<8x128xf32>
      tpu.vector_store %arg10[%c0_95, %c0_96], %176 {strides = array<i32>} : memref<8x128xf32, #tpu.memory_space<vmem>>, vector<8x128xf32>,
      %c3_i32 = arith.constant 3 : i32
      %178 = arith.index_cast %c3_i32 : i32 to index
      %c0_97 = arith.constant 0 : index
      %c0_98 = arith.constant 0 : index
      %179 = vector.load %arg3[%178, %c0_97, %c0_98] : memref<4x8x1xi32, #tpu.memory_space<vmem>>, vector<1x8x1xi32>
      %180 = vector.shape_cast %179 : vector<1x8x1xi32> to vector<8x1xi32>
      %181 = vector.broadcast %180 : vector<8x1xi32> to vector<8x128xi32>
      %182 = arith.cmpi eq, %9, %181 : vector<8x128xi32>
      %183 = arith.extui %182 : vector<8x128xi1> to vector<8x128xi32>
      %184 = arith.sitofp %183 : vector<8x128xi32> to vector<8x128xf32>
      %185 = arith.index_cast %c3_i32 : i32 to index
      %c0_99 = arith.constant 0 : index
      %c0_100 = arith.constant 0 : index
      %186 = vector.load %arg4[%185, %c0_99, %c0_100] : memref<4x8x1xf32, #tpu.memory_space<vmem>>, vector<1x8x1xf32>
      %187 = vector.shape_cast %186 : vector<1x8x1xf32> to vector<8x1xf32>
      %188 = arith.index_cast %c3_i32 : i32 to index
      %c0_101 = arith.constant 0 : index
      %c0_102 = arith.constant 0 : index
      %189 = vector.load %arg2[%188, %c0_101, %c0_102] : memref<4x8x128xf32, #tpu.memory_space<vmem>>, vector<1x8x128xf32>
      %190 = vector.shape_cast %189 : vector<1x8x128xf32> to vector<8x128xf32>
      %191 = arith.mulf %190, %184 : vector<8x128xf32>
      %cst_103 = arith.constant dense<0.000000e+00> : vector<8xf32>
      %192 = vector.multi_reduction <add>, %191, %cst_103 [1] : vector<8x128xf32> to vector<8xf32>
      %193 = vector.shape_cast %192 : vector<8xf32> to vector<8x1xf32>
      %c0_104 = arith.constant 0 : index
      %c0_105 = arith.constant 0 : index
      %194 = vector.load %arg12[%c0_104, %c0_105] : memref<8x128xf32, #tpu.memory_space<vmem>>, vector<8x128xf32>
      %cst_106 = arith.constant dense<0.000000e+00> : vector<8x128xf32>
      %195 = tpu.matmul %194, %1, %cst_106 {dimension_numbers = #tpu.dot_dimension_numbers<[1], [0], [0], [1], [0, 0, 1, 1], [], []>} : vector<8x128xf32>, vector<128x128xf32>, vector<8x128xf32> -> vector<8x128xf32>
      %196 = arith.mulf %195, %184 : vector<8x128xf32>
      %cst_107 = arith.constant dense<0.000000e+00> : vector<8xf32>
      %197 = vector.multi_reduction <add>, %196, %cst_107 [1] : vector<8x128xf32> to vector<8xf32>
      %198 = vector.shape_cast %197 : vector<8xf32> to vector<8x1xf32>
      %c0_108 = arith.constant 0 : index
      %c0_109 = arith.constant 0 : index
      %199 = vector.load %arg9[%c0_108, %c0_109] : memref<8x1xf32, #tpu.memory_space<vmem>>, vector<8x1xf32>
      %200 = arith.addf %193, %198 : vector<8x1xf32>
      %201 = arith.mulf %200, %187 : vector<8x1xf32>
      %202 = arith.addf %199, %201 : vector<8x1xf32>
      %c0_110 = arith.constant 0 : index
      %c0_111 = arith.constant 0 : index
      %203 = vector.load %arg9[%c0_110, %c0_111] : memref<8x1xf32, #tpu.memory_space<vmem>>, vector<8x1xf32>
      tpu.vector_store %arg9[%c0_110, %c0_111], %202 {strides = array<i32>} : memref<8x1xf32, #tpu.memory_space<vmem>>, vector<8x1xf32>,
      %cst_112 = arith.constant 0.000000e+00 : f32
      %204 = vector.broadcast %cst_112 : f32 to vector<8x1xf32>
      %205 = arith.cmpf ogt, %187, %204 : vector<8x1xf32>
      %c0_113 = arith.constant 0 : index
      %c0_114 = arith.constant 0 : index
      %206 = vector.load %arg11[%c0_113, %c0_114] : memref<8x128xf32, #tpu.memory_space<vmem>>, vector<8x128xf32>
      %207 = vector.shape_cast %205 : vector<8x1xi1> to vector<8x1xi1>
      %208 = vector.broadcast %207 : vector<8x1xi1> to vector<8x128xi1>
      %209 = arith.select %208, %184, %206 : vector<8x128xi1>, vector<8x128xf32>
      %c0_115 = arith.constant 0 : index
      %c0_116 = arith.constant 0 : index
      %210 = vector.load %arg11[%c0_115, %c0_116] : memref<8x128xf32, #tpu.memory_space<vmem>>, vector<8x128xf32>
      tpu.vector_store %arg11[%c0_115, %c0_116], %209 {strides = array<i32>} : memref<8x128xf32, #tpu.memory_space<vmem>>, vector<8x128xf32>,
      %c0_117 = arith.constant 0 : index
      %c0_118 = arith.constant 0 : index
      %211 = vector.load %arg12[%c0_117, %c0_118] : memref<8x128xf32, #tpu.memory_space<vmem>>, vector<8x128xf32>
      tpu.vector_store %arg12[%c0_117, %c0_118], %184 {strides = array<i32>} : memref<8x128xf32, #tpu.memory_space<vmem>>, vector<8x128xf32>,
      %c0_119 = arith.constant 0 : index
      %c0_120 = arith.constant 0 : index
      %212 = vector.load %arg10[%c0_119, %c0_120] : memref<8x128xf32, #tpu.memory_space<vmem>>, vector<8x128xf32>
      %cst_121 = arith.constant dense<0xFF800000> : vector<8xf32>
      %213 = vector.multi_reduction <maximumf>, %212, %cst_121 [1] : vector<8x128xf32> to vector<8xf32>
      %214 = vector.shape_cast %213 : vector<8xf32> to vector<8x1xf32>
      %215 = vector.broadcast %214 : vector<8x1xf32> to vector<8x128xf32>
      %216 = arith.subf %212, %215 : vector<8x128xf32>
      %217 = math.exp %216 : vector<8x128xf32>
      %cst_122 = arith.constant dense<0.000000e+00> : vector<8x128xf32>
      %218 = tpu.matmul %217, %8, %cst_122 {dimension_numbers = #tpu.dot_dimension_numbers<[1], [0], [0], [1], [0, 0, 1, 1], [], []>} : vector<8x128xf32>, vector<128x128xf32>, vector<8x128xf32> -> vector<8x128xf32>
      %219 = math.log %218 : vector<8x128xf32>
      %220 = vector.broadcast %214 : vector<8x1xf32> to vector<8x128xf32>
      %221 = arith.addf %219, %220 : vector<8x128xf32>
      %222 = vector.broadcast %5 : vector<1x1xf32> to vector<8x128xf32>
      %223 = arith.addf %221, %222 : vector<8x128xf32>
      %224 = arith.addf %223, %190 : vector<8x128xf32>
      %cst_123 = arith.constant 0.000000e+00 : f32
      %225 = vector.broadcast %cst_123 : f32 to vector<8x1xf32>
      %226 = arith.cmpf ogt, %187, %225 : vector<8x1xf32>
      %227 = vector.shape_cast %226 : vector<8x1xi1> to vector<8x1xi1>
      %228 = vector.broadcast %227 : vector<8x1xi1> to vector<8x128xi1>
      %229 = arith.select %228, %224, %212 : vector<8x128xi1>, vector<8x128xf32>
      %c0_124 = arith.constant 0 : index
      %c0_125 = arith.constant 0 : index
      %230 = vector.load %arg10[%c0_124, %c0_125] : memref<8x128xf32, #tpu.memory_space<vmem>>, vector<8x128xf32>
      tpu.vector_store %arg10[%c0_124, %c0_125], %229 {strides = array<i32>} : memref<8x128xf32, #tpu.memory_space<vmem>>, vector<8x128xf32>,
      %c4_i32 = arith.constant 4 : i32
    } else {
    }
    %c1_i32 = arith.constant 1 : i32
    %16 = arith.cmpi eq, %arg1, %c1_i32 : i32
    %17 = arith.extui %16 : i1 to i32
    %c0_i32_7 = arith.constant 0 : i32
    %18 = arith.cmpi ne, %17, %c0_i32_7 : i32
    scf.if %18 {
      %c0_8 = arith.constant 0 : index
      %c0_9 = arith.constant 0 : index
      %19 = vector.load %arg6[%c0_8, %c0_9] : memref<1x128xf32, #tpu.memory_space<vmem>>, vector<1x128xf32>
      %c0_10 = arith.constant 0 : index
      %c0_11 = arith.constant 0 : index
      %20 = vector.load %arg9[%c0_10, %c0_11] : memref<8x1xf32, #tpu.memory_space<vmem>>, vector<8x1xf32>
      %c0_12 = arith.constant 0 : index
      %c0_13 = arith.constant 0 : index
      %21 = vector.load %arg11[%c0_12, %c0_13] : memref<8x128xf32, #tpu.memory_space<vmem>>, vector<8x128xf32>
      %22 = vector.broadcast %19 : vector<1x128xf32> to vector<8x128xf32>
      %23 = arith.mulf %22, %21 : vector<8x128xf32>
      %cst_14 = arith.constant dense<0.000000e+00> : vector<8xf32>
      %24 = vector.multi_reduction <add>, %23, %cst_14 [1] : vector<8x128xf32> to vector<8xf32>
      %25 = vector.shape_cast %24 : vector<8xf32> to vector<8x1xf32>
      %26 = arith.addf %20, %25 : vector<8x1xf32>
      %c0_15 = arith.constant 0 : index
      %c0_16 = arith.constant 0 : index
      %27 = vector.load %arg10[%c0_15, %c0_16] : memref<8x128xf32, #tpu.memory_space<vmem>>, vector<8x128xf32>
      %28 = vector.broadcast %19 : vector<1x128xf32> to vector<8x128xf32>
      %29 = arith.addf %27, %28 : vector<8x128xf32>
      %cst_17 = arith.constant dense<0xFF800000> : vector<8xf32>
      %30 = vector.multi_reduction <maximumf>, %29, %cst_17 [1] : vector<8x128xf32> to vector<8xf32>
      %31 = vector.shape_cast %30 : vector<8xf32> to vector<8x1xf32>
      %32 = vector.broadcast %31 : vector<8x1xf32> to vector<8x128xf32>
      %33 = arith.subf %29, %32 : vector<8x128xf32>
      %34 = math.exp %33 : vector<8x128xf32>
      %cst_18 = arith.constant dense<0.000000e+00> : vector<8xf32>
      %35 = vector.multi_reduction <add>, %34, %cst_18 [1] : vector<8x128xf32> to vector<8xf32>
      %36 = vector.shape_cast %35 : vector<8xf32> to vector<8x1xf32>
      %37 = math.log %36 : vector<8x1xf32>
      %38 = arith.addf %37, %31 : vector<8x1xf32>
      %39 = arith.subf %26, %38 : vector<8x1xf32>
      %c0_19 = arith.constant 0 : index
      %c0_20 = arith.constant 0 : index
      %40 = vector.load %arg8[%c0_19, %c0_20] : memref<8x1xf32, #tpu.memory_space<vmem>>, vector<8x1xf32>
      tpu.vector_store %arg8[%c0_19, %c0_20], %39 {strides = array<i32>} : memref<8x1xf32, #tpu.memory_space<vmem>>, vector<8x1xf32>,
    } else {
    }
    return
  }
  func.func @transform_0(%arg0: i32, %arg1: i32) -> (i32, i32, i32) {
    %c0_i32 = arith.constant 0 : i32
    %c0_i32_0 = arith.constant 0 : i32
    return %arg1, %arg0, %c0_i32 : i32, i32, i32
  }
  func.func @transform_1(%arg0: i32, %arg1: i32) -> (i32, i32, i32) {
    %c0_i32 = arith.constant 0 : i32
    %c0_i32_0 = arith.constant 0 : i32
    return %arg1, %arg0, %c0_i32 : i32, i32, i32
  }
  func.func @transform_2(%arg0: i32, %arg1: i32) -> (i32, i32, i32) {
    %c0_i32 = arith.constant 0 : i32
    %c0_i32_0 = arith.constant 0 : i32
    return %arg1, %arg0, %c0_i32 : i32, i32, i32
  }
  func.func @transform_3(%arg0: i32, %arg1: i32) -> (i32, i32) {
    %c0_i32 = arith.constant 0 : i32
    %c0_i32_0 = arith.constant 0 : i32
    %c0_i32_1 = arith.constant 0 : i32
    return %c0_i32, %c0_i32_0 : i32, i32
  }
  func.func @transform_4(%arg0: i32, %arg1: i32) -> (i32, i32) {
    %c0_i32 = arith.constant 0 : i32
    %c0_i32_0 = arith.constant 0 : i32
    %c0_i32_1 = arith.constant 0 : i32
    return %c0_i32, %c0_i32_0 : i32, i32
  }
  func.func @transform_5(%arg0: i32, %arg1: i32) -> (i32, i32) {
    %c0_i32 = arith.constant 0 : i32
    %c0_i32_0 = arith.constant 0 : i32
    %c0_i32_1 = arith.constant 0 : i32
    return %c0_i32, %c0_i32_0 : i32, i32
  }
  func.func @transform_6(%arg0: i32, %arg1: i32) -> (i32, i32) {
    %c0_i32 = arith.constant 0 : i32
    %c0_i32_0 = arith.constant 0 : i32
    return %arg0, %c0_i32 : i32, i32
  }
}

</mosaic_0001>

<bundles_post_ra>
// kernel: crf_forward.1
= control target key start
LH: loop header
LB: loop body
LE: loop exit
PB: predicated region body
PF: predicated region fallthrough
CT: control target
= control target key end

     0   :  { %s2872_s21 = smov 0   ;;  %s2874_s22 = smov 0   ;;  %s3818_s0 = inlined_call_operand.vmem [shape: f32[8,8,128], index: 0, kind: input, shape index: {}]   ;;  %s3819_s1 = inlined_call_operand.vmem [shape: s32[8,8,1], index: 1, kind: input, shape index: {}]   ;;  %s3820_s2 = inlined_call_operand.vmem [shape: f32[8,8,1], index: 2, kind: input, shape index: {}]   ;;  %s3821_s3 = inlined_call_operand.vmem [shape: f32[1,128], index: 3, kind: input, shape index: {}]   ;;  %s3822_s4 = inlined_call_operand.vmem [shape: f32[1,128], index: 4, kind: input, shape index: {}]   ;;  %s3823_s5 = inlined_call_operand.vmem [shape: f32[128,128], index: 5, kind: input, shape index: {}]   ;;  %s3824_s6 = inlined_call_operand.vmem [shape: f32[8,1], index: 6, kind: output, shape index: {}]  }
   0x1   :  { %s2876_s23 = smov 0  }
   0x2 LB: > { %s25_s24 = sadd.s32 1, %s2823_s22  ;;  %p1932_p0 = scmp.ge.s32.totalorder %s2827_s23, 1  ;;  %s2827_s23 = sphi %s2876_s23, %s16_s23   ;;  %s2823_s22 = sphi %s2874_s22, %s3826_s22   ;;  %s2819_s21 = sphi %s2872_s21, %s3825_s21  }
   0x3   : > { %p26_p1 = scmp.ge.s32.totalorder %s25_s24, 2  ;;  %p262_p2 = scmp.lt.s32.totalorder %s2827_s23, 3 }
   0x5   : > { %s3828_s24 = smov (%p26_p1, %s25_s24), 0  ;;  %p263_p3 = pnand %p1932_p0, %p262_p2 }
   0x6   : > { %s1933_s13 = sshll.u32 (!%p263_p3), %s2819_s21, 2  ;;  %p1939_p5 = scmp.ne.s32.totalorder (!%p263_p3), %s2819_s21, 0 }
   0x7   : > { %266 = sbr.rel (%p263_p3) target bundleno = 3172 (0xc64), region = 44  ;;  %p311_p4 = scmp.lt.s32.totalorder (!%p263_p3), %s1933_s13, 7 }
   0xc   : > { %v2895_v0 = vld [vmem:[%s3823_s5 + $0x10] sm:$0xff]  ;;  %v2900_v1 = vld [vmem:[%s3823_s5] sm:$0xff]  ;;  %v2907_v2 = vld [vmem:[%s3823_s5 + $0x18] sm:$0xff]  ;;  %s3830_s13 = smov (!%p311_p4, %s1933_s13), 7  ;;  %v459_v16 = vlaneseq }
   0xd   : > { %362 = vmax.xlane.f32.xlu1 %v2895_v0  ;;  %358 = vmax.xlane.f32.xlu0 %v2900_v1  ;;  %v2912_v3 = vld [vmem:[%s3823_s5 + $0x8] sm:$0xff]  ;;  %v2924_v5 = vld [vmem:[%s3823_s5 + $0x20] sm:$0xff]  ;;  %v2931_v6 = vld [vmem:[%s3823_s5 + $0x38] sm:$0xff]  ;;  %s1934_s14 = sshll.u32 %s3830_s13, 3 }
   0xe   : > { %v2919_v4 = vld [vmem:[%s3823_s5 + $0x28] sm:$0xff]  ;;  %v2936_v7 = vld [vmem:[%s3823_s5 + $0x30] sm:$0xff]  ;;  %v2948_v9 = vld [vmem:[%s3823_s5 + $0x40] sm:$0xff]  ;;  %s2992_s17 = scalar_lea.vmem %s3818_s0, %s1934_s14  ;;  %s2997_s20 = scalar_lea.vmem %s3819_s1, %s1934_s14  ;;  %v3004_v18 = vand.u32 127, %v459_v16 }
   0xf   : > { %v2943_v8 = vld [vmem:[%s3823_s5 + $0x48] sm:$0xff]  ;;  %v2955_v10 = vld [vmem:[%s3823_s5 + $0x58] sm:$0xff]  ;;  %v2960_v11 = vld [vmem:[%s3823_s5 + $0x50] sm:$0xff]  ;;  %s3009_s29 = scalar_lea.vmem %s3820_s2, %s1934_s14 }
  0x10   : > { %v2967_v12 = vld [vmem:[%s3823_s5 + $0x68] sm:$0xff]  ;;  %v2972_v13 = vld [vmem:[%s3823_s5 + $0x60] sm:$0xff]  ;;  %v2979_v14 = vld [vmem:[%s3823_s5 + $0x78] sm:$0xff] }
  0x11   : > { %364 = vmax.xlane.f32.xlu1 %v2907_v2  ;;  %360 = vmax.xlane.f32.xlu0 %v2912_v3  ;;  %v2984_v15 = vld [vmem:[%s3823_s5 + $0x70] sm:$0xff]  ;;  %v3002_v17 = vld [vmem:[%s3821_s3] ss:$0 sm:$0xff] }
  0x15   : > { %368 = vmax.xlane.f32.xlu1 %v2919_v4  ;;  %366 = vmax.xlane.f32.xlu0 %v2924_v5 }
  0x19   : > { %372 = vmax.xlane.f32.xlu1 %v2931_v6  ;;  %370 = vmax.xlane.f32.xlu0 %v2936_v7 }
  0x1d   : > { %376 = vmax.xlane.f32.xlu1 %v2943_v8  ;;  %374 = vmax.xlane.f32.xlu0 %v2948_v9 }
  0x21   : > { %380 = vmax.xlane.f32.xlu1 %v2955_v10  ;;  %378 = vmax.xlane.f32.xlu0 %v2960_v11 }
  0x25   : > { %384 = vmax.xlane.f32.xlu1 %v2967_v12  ;;  %382 = vmax.xlane.f32.xlu0 %v2972_v13 }
  0x29   : > { %388 = vmax.xlane.f32.xlu1 %v2979_v14  ;;  %386 = vmax.xlane.f32.xlu0 %v2984_v15 }
  0x96   : > { %v363_v19 = vpop.xlane.xlu1 %362  ;;  %v359_v20 = vpop.xlane.xlu0 %358 }
  0x9a   : > { %v365_v21 = vpop.xlane.xlu1 %364  ;;  %v361_v22 = vpop.xlane.xlu0 %360 }
  0x9e   : > { %v369_v23 = vpop.xlane.xlu1 %368  ;;  %v367_v24 = vpop.xlane.xlu0 %366 }
  0x9f   : > { %v391_v31 = vmax.f32 %v361_v22, %v369_v23  ;;  %v390_v32 = vmax.f32 %v359_v20, %v367_v24 }
  0xa2   : > { %v373_v25 = vpop.xlane.xlu1 %372  ;;  %v371_v26 = vpop.xlane.xlu0 %370 }
  0xa3   : > { %v393_v35 = vmax.f32 %v365_v21, %v373_v25  ;;  %v392_v36 = vmax.f32 %v363_v19, %v371_v26 }
  0xa6   : > { %v377_v27 = vpop.xlane.xlu1 %376  ;;  %v375_v28 = vpop.xlane.xlu0 %374 }
  0xa7   : > { %v395_v37 = vmax.f32 %v391_v31, %v377_v27  ;;  %v394_v38 = vmax.f32 %v390_v32, %v375_v28 }
  0xaa   : > { %v381_v29 = vpop.xlane.xlu1 %380  ;;  %v379_v30 = vpop.xlane.xlu0 %378 }
  0xab   : > { %v397_v39 = vmax.f32 %v393_v35, %v381_v29  ;;  %v396_v40 = vmax.f32 %v392_v36, %v379_v30 }
  0xae   : > { %v385_v33 = vpop.xlane.xlu1 %384  ;;  %v383_v34 = vpop.xlane.xlu0 %382 }
  0xaf   : > { %v399_v41 = vmax.f32 %v395_v37, %v385_v33  ;;  %v398_v42 = vmax.f32 %v394_v38, %v383_v34 }
  0xb1   : > { %v402_v47 = vmax.f32 %v398_v42, %v399_v41 }
  0xb2   : > { %v389_v43 = vpop.xlane.xlu1 %388  ;;  %v387_v44 = vpop.xlane.xlu0 %386 }
  0xb3   : > { %v401_v45 = vmax.f32 %v397_v39, %v389_v43  ;;  %v400_v46 = vmax.f32 %v396_v40, %v387_v44 }
  0xb5   : > { %v403_v48 = vmax.f32 %v400_v46, %v401_v45 }
  0xb7   : > { %v404_v49 = vmax.f32 %v402_v47, %v403_v48 }
  0xb9   : > { %v405_v50 = vrot.slane %v404_v49, 4 }
  0xbb   : > { %v406_v51 = vmax.f32 %v404_v49, %v405_v50 }
  0xbd   : > { %v407_v52 = vrot.slane %v406_v51, 2 }
  0xbf   : > { %v408_v53 = vmax.f32 %v406_v51, %v407_v52 }
  0xc1   : > { %v409_v54 = vrot.slane %v408_v53, 1 }
  0xc3   : > { %v3011_v55 = vmax.f32 %v408_v53, %v409_v54 }
  0xc5   : > { %v411_v56 = vsub.f32 %v2900_v1, %v3011_v55  ;;  %v412_v57 = vsub.f32 %v2912_v3, %v3011_v55  ;;  %v413_v58 = vsub.f32 %v2895_v0, %v3011_v55  ;;  %v414_v59 = vsub.f32 %v2907_v2, %v3011_v55 }
  0xc6   : > { %v415_v60 = vsub.f32 %v2924_v5, %v3011_v55  ;;  %v416_v61 = vsub.f32 %v2919_v4, %v3011_v55  ;;  %v417_v62 = vsub.f32 %v2936_v7, %v3011_v55  ;;  %v418_v20 = vsub.f32 %v2931_v6, %v3011_v55 }
  0xc7   : > { %v427_v63 = vmul.f32 1.442695, %v411_v56  ;;  %v429_v16 = vmul.f32 1.442695, %v412_v57  ;;  %v431_v19 = vmul.f32 1.442695, %v413_v58  ;;  %v419_v22 = vsub.f32 %v2948_v9, %v3011_v55 }
  0xc8   : > { %v433_v21 = vmul.f32 1.442695, %v414_v59  ;;  %v435_v23 = vmul.f32 1.442695, %v415_v60  ;;  %v420_v24 = vsub.f32 %v2943_v8, %v3011_v55  ;;  %v437_v25 = vmul.f32 1.442695, %v416_v61 }
  0xc9   : > { %2731 = vpow2.f32 %v427_v63  ;;  %v421_v26 = vsub.f32 %v2960_v11, %v3011_v55  ;;  %v439_v27 = vmul.f32 1.442695, %v417_v62  ;;  %v422_v28 = vsub.f32 %v2955_v10, %v3011_v55 }
  0xca   : > { %2733 = vpow2.f32 %v429_v16  ;;  %v441_v29 = vmul.f32 1.442695, %v418_v20  ;;  %v423_v30 = vsub.f32 %v2972_v13, %v3011_v55  ;;  %v443_v31 = vmul.f32 1.442695, %v419_v22 }
  0xcb   : > { %2735 = vpow2.f32 %v431_v19  ;;  %v424_v32 = vsub.f32 %v2967_v12, %v3011_v55  ;;  %v445_v33 = vmul.f32 1.442695, %v420_v24  ;;  %v425_v34 = vsub.f32 %v2984_v15, %v3011_v55 }
  0xcc   : > { %2737 = vpow2.f32 %v433_v21  ;;  %v447_v35 = vmul.f32 1.442695, %v421_v26  ;;  %v426_v36 = vsub.f32 %v2979_v14, %v3011_v55  ;;  %v449_v37 = vmul.f32 1.442695, %v422_v28 }
  0xcd   : > { %2739 = vpow2.f32 %v435_v23  ;;  %v451_v38 = vmul.f32 1.442695, %v423_v30  ;;  %v453_v39 = vmul.f32 1.442695, %v424_v32  ;;  %v455_v40 = vmul.f32 1.442695, %v425_v34 }
  0xce   : > { %2741 = vpow2.f32 %v437_v25  ;;  %v457_v41 = vmul.f32 1.442695, %v426_v36 }
  0xcf   : > { %2743 = vpow2.f32 %v439_v27 }
  0xd0   : > { %2745 = vpow2.f32 %v441_v29 }
  0xd1   : > { %2747 = vpow2.f32 %v443_v31 }
  0xd2   : > { %2749 = vpow2.f32 %v445_v33 }
  0xd3   : > { %2751 = vpow2.f32 %v447_v35 }
  0xd4   : > { %2753 = vpow2.f32 %v449_v37 }
  0xd5   : > { %2755 = vpow2.f32 %v451_v38 }
  0xd6   : > { %v3045_v42 = vpop.eup %2731  ;;  %2757 = vpow2.f32 %v453_v39 }
  0xd7   : > { %v3047_v43 = vpop.eup %2733  ;;  %2759 = vpow2.f32 %v455_v40 }
  0xd8   : > { %v3049_v44 = vpop.eup %2735  ;;  %2761 = vpow2.f32 %v457_v41 }
  0xd9   : > { %v3051_v45 = vpop.eup %2737 }
  0xda   : > { %v3053_v46 = vpop.eup %2739 }
  0xdb   : > { %v3055_v47 = vpop.eup %2741 }
  0xdc   : > { %v3057_v48 = vpop.eup %2743 }
  0xdd   : > { %v3059_v49 = vpop.eup %2745 }
  0xde   : > { %v3061_v50 = vpop.eup %2747 }
  0xdf   : > { %v3063_v51 = vpop.eup %2749 }
  0xe0   : > { %v3065_v52 = vpop.eup %2751 }
  0xe1   : > { %v3067_v53 = vpop.eup %2753  ;;  %464 = sbr.rel (%p1939_p5) target bundleno = 1350 (0x546), region = 48 }
  0xe2   : > { %v3069_v54 = vpop.eup %2755 }
  0xe3   : > { %v3071_v56 = vpop.eup %2757 }
  0xe4   : > { %v3073_v57 = vpop.eup %2759 }
  0xe5   : > { %v3075_v58 = vpop.eup %2761 }
  0xe6   : > { %v3079_v59 = vld [vmem:[%s2992_s17] sm:$0xff]  ;;  %v2829_v61 = vmov 0.0   ;;  %vm2830_vm0 = vmmov 0   ;;  %v3148_v62 = vld [vmem:[%s3009_s29 + $0x8] sm:$0xff]  ;;  %v2831_v63 = vmov 0   ;;  %v3213_v33 = vld [vmem:[%s3009_s29 + $0x10] sm:$0xff] }
  0xe7   : > { %v3083_v60 = vadd.f32 %v3002_v17, %v3079_v59  ;;  %2246 = vmatprep.subr.mxu1 %v2829_v61  ;;  %2211 = vmatprep.subr.mxu0 %v2829_v61  ;;  %vm588_vm1 = vcmp.gt.f32.partialorder %v3148_v62, 0.0  ;;  %v3201_v29 = vld [vmem:[%s2992_s17 + $0x8] sm:$0xff]  ;;  %v465_v34 = vld [vmem:[%s2997_s20] sm:$0xff]  ;;  %vm775_vm3 = vcmp.gt.f32.partialorder %v3213_v33, 0.0  ;;  %v1946_v37 = vld [vmem:[%s2997_s20 + $0x10] sm:$0xff]  ;;  %vm488_vm10 = vcmask 7168  }
  0xe8   : > { %2247 = vmatpush3.msra.mxu1 %v3075_v58  ;;  %2212 = vmatpush3.msra.mxu0 %v2979_v14  ;;  %v590_v16 = vsel %vm588_vm1, 1, %v2831_v63  ;;  %v777_v35 = vsel %vm775_vm3, 1, %v2831_v63  ;;  %v1942_v36 = vld [vmem:[%s2997_s20 + $0x8] sm:$0xff] }
  0xe9   : > { %599 = vmax.xlane.f32.xlu0 %v3083_v60  ;;  %2248 = vmatprep.subr.mxu1 %v2829_v61 }
  0xea   : > { %2249 = vmatpush3.msra.mxu1 %v3073_v57  ;;  %2213 = vmatprep.subr.mxu0 %v2829_v61 }
  0xeb   : > { %2250 = vmatprep.subr.mxu1 %v2829_v61  ;;  %2214 = vmatpush3.msra.mxu0 %v2984_v15 }
  0xec   : > { %2251 = vmatpush3.msra.mxu1 %v3071_v56  ;;  %2215 = vmatprep.subr.mxu0 %v2829_v61 }
  0xed   : > { %2252 = vmatprep.subr.mxu1 %v2829_v61  ;;  %2216 = vmatpush3.msra.mxu0 %v2967_v12 }
  0xee   : > { %2253 = vmatpush3.msra.mxu1 %v3069_v54  ;;  %2217 = vmatprep.subr.mxu0 %v2829_v61 }
  0xef   : > { %2254 = vmatprep.subr.mxu1 %v2829_v61  ;;  %2218 = vmatpush3.msra.mxu0 %v2972_v13 }
  0xf0   : > { %2255 = vmatpush3.msra.mxu1 %v3067_v53  ;;  %2219 = vmatprep.subr.mxu0 %v2829_v61 }
  0xf1   : > { %2256 = vmatprep.subr.mxu1 %v2829_v61  ;;  %2220 = vmatpush3.msra.mxu0 %v2955_v10 }
  0xf2   : > { %2257 = vmatpush3.msra.mxu1 %v3065_v52  ;;  %2221 = vmatprep.subr.mxu0 %v2829_v61 }
  0xf3   : > { %2258 = vmatprep.subr.mxu1 %v2829_v61  ;;  %2222 = vmatpush3.msra.mxu0 %v2960_v11 }
  0xf4   : > { %2259 = vmatpush3.msra.mxu1 %v3063_v51  ;;  %2223 = vmatprep.subr.mxu0 %v2829_v61 }
  0xf5   : > { %2260 = vmatprep.subr.mxu1 %v2829_v61  ;;  %2224 = vmatpush3.msra.mxu0 %v2943_v8 }
  0xf6   : > { %2261 = vmatpush3.msra.mxu1 %v3061_v50  ;;  %2225 = vmatprep.subr.mxu0 %v2829_v61 }
  0xf7   : > { %2262 = vmatprep.subr.mxu1 %v2829_v61  ;;  %2226 = vmatpush3.msra.mxu0 %v2948_v9 }
  0xf8   : > { %2263 = vmatpush3.msra.mxu1 %v3059_v49  ;;  %2278 = vmatprep.mubr.msk.f32.mxu1 %vm2830_vm0, %v2829_v61 }
  0xf9   : > { %2264 = vmatprep.subr.mxu1 %v2829_v61  ;;  %2227 = vmatprep.subr.mxu0 %v2829_v61 }
  0xfa   : > { %2265 = vmatpush3.msra.mxu1 %v3057_v48  ;;  %2228 = vmatpush3.msra.mxu0 %v2931_v6 }
  0xfb   : > { %2266 = vmatprep.subr.mxu1 %v2829_v61  ;;  %2229 = vmatprep.subr.mxu0 %v2829_v61 }
  0xfc   : > { %2267 = vmatpush3.msra.mxu1 %v3055_v47  ;;  %2230 = vmatpush3.msra.mxu0 %v2936_v7 }
  0xfd   : > { %2268 = vmatprep.subr.mxu1 %v2829_v61  ;;  %2231 = vmatprep.subr.mxu0 %v2829_v61 }
  0xfe   : > { %2269 = vmatpush3.msra.mxu1 %v3053_v46  ;;  %2232 = vmatpush3.msra.mxu0 %v2919_v4 }
  0xff   : > { %2270 = vmatprep.subr.mxu1 %v2829_v61  ;;  %2233 = vmatprep.subr.mxu0 %v2829_v61 }
 0x100   : > { %2271 = vmatpush3.msra.mxu1 %v3051_v45  ;;  %2234 = vmatpush3.msra.mxu0 %v2924_v5 }
 0x101   : > { %2272 = vmatprep.subr.mxu1 %v2829_v61  ;;  %2235 = vmatprep.subr.mxu0 %v2829_v61 }
 0x102   : > { %2273 = vmatpush3.msra.mxu1 %v3049_v44  ;;  %2236 = vmatpush3.msra.mxu0 %v2907_v2 }
 0x103   : > { %2274 = vmatprep.subr.mxu1 %v2829_v61  ;;  %2237 = vmatprep.subr.mxu0 %v2829_v61 }
 0x104   : > { %2275 = vmatpush3.msra.mxu1 %v3047_v43  ;;  %2238 = vmatpush3.msra.mxu0 %v2895_v0 }
 0x105   : > { %2276 = vmatprep.subr.mxu1 %v2829_v61  ;;  %2239 = vmatprep.subr.mxu0 %v2829_v61 }
 0x106   : > { %2277 = vmatpush3.msra.mxu1 %v3045_v42  ;;  %2763 = vset.pattern.permute.xlu0 %v2831_v63 }
 0x107   : > { %2764 = vset.pattern.permute.xlu1 %v2831_v63  ;;  %2316 = vmatprep.subr.mxu1 %v2829_v61 }
 0x108   : > { %592 = vperm.xlu0 %2763, %v590_v16   ;;  %2240 = vmatpush3.msra.mxu0 %v2912_v3  ;;  %v2832_v16 = vmov 1.0  }
 0x109   : > { %2241 = vmatprep.subr.mxu0 %v2829_v61  ;;  %2243 = vmatprep.mubr.msk.f32.mxu0 %vm2830_vm0, %v2829_v61 }
 0x10a   : > { %2242 = vmatpush3.msra.mxu0 %v2900_v1 }
 0x10b   : > { %2281 = vmatprep.subr.mxu0 %v2829_v61 }
 0x172   : > { %v600_v19 = vpop.xlane.xlu0 %599 }
 0x173   : > { %v601_v20 = vsub.f32 %v3083_v60, %v600_v19 }
 0x175   : > { %v602_v21 = vmul.f32 1.442695, %v601_v20 }
 0x177   : > { %2765 = vpow2.f32 %v602_v21 }
 0x183   : > { %v3198_v28 = vpop.permute.xlu0 %592 }
 0x184   : > { %v2766_v22 = vpop.eup %2765  ;;  %vm594_vm2 = vcmp.eq.s32.totalorder %v3198_v28, 1 }
 0x185   : > { %2279 = vmatmul.mubr.f32.vlgmr.msra.gmra.mxu1 %v2766_v22  ;;  %v3246_v22 = vld [vmem:[%s2992_s17 + $0x10] sm:$0xff] }
 0x186   : > { %2317 = vmatpush3.msra.mxu1 %v3075_v58  ;;  %2348 = vmatprep.mubr.msk.f32.mxu1 %vm2830_vm0, %v2829_v61 }
 0x187   : > { %2318 = vmatprep.subr.mxu1 %v2829_v61 }
 0x188   : > { %2319 = vmatpush3.msra.mxu1 %v3073_v57 }
 0x189   : > { %2320 = vmatprep.subr.mxu1 %v2829_v61 }
 0x18a   : > { %2321 = vmatpush3.msra.mxu1 %v3071_v56 }
 0x18b   : > { %2322 = vmatprep.subr.mxu1 %v2829_v61 }
 0x18c   : > { %2323 = vmatpush3.msra.mxu1 %v3069_v54 }
 0x18d   : > { %2324 = vmatprep.subr.mxu1 %v2829_v61 }
 0x18e   : > { %2325 = vmatpush3.msra.mxu1 %v3067_v53 }
 0x18f   : > { %2326 = vmatprep.subr.mxu1 %v2829_v61 }
 0x190   : > { %2327 = vmatpush3.msra.mxu1 %v3065_v52 }
 0x191   : > { %2328 = vmatprep.subr.mxu1 %v2829_v61 }
 0x192   : > { %2329 = vmatpush3.msra.mxu1 %v3063_v51 }
 0x193   : > { %2330 = vmatprep.subr.mxu1 %v2829_v61 }
 0x194   : > { %2331 = vmatpush3.msra.mxu1 %v3061_v50 }
 0x195   : > { %2332 = vmatprep.subr.mxu1 %v2829_v61 }
 0x196   : > { %2333 = vmatpush3.msra.mxu1 %v3059_v49 }
 0x197   : > { %2334 = vmatprep.subr.mxu1 %v2829_v61 }
 0x198   : > { %2335 = vmatpush3.msra.mxu1 %v3057_v48 }
 0x199   : > { %2336 = vmatprep.subr.mxu1 %v2829_v61 }
 0x19a   : > { %2337 = vmatpush3.msra.mxu1 %v3055_v47 }
 0x19b   : > { %2338 = vmatprep.subr.mxu1 %v2829_v61 }
 0x19c   : > { %2339 = vmatpush3.msra.mxu1 %v3053_v46 }
 0x19d   : > { %2340 = vmatprep.subr.mxu1 %v2829_v61 }
 0x19e   : > { %2341 = vmatpush3.msra.mxu1 %v3051_v45 }
 0x19f   : > { %2342 = vmatprep.subr.mxu1 %v2829_v61 }
 0x1a0   : > { %2343 = vmatpush3.msra.mxu1 %v3049_v44 }
 0x1a1   : > { %2344 = vmatprep.subr.mxu1 %v2829_v61 }
 0x1a2   : > { %2345 = vmatpush3.msra.mxu1 %v3047_v43 }
 0x1a3   : > { %2346 = vmatprep.subr.mxu1 %v2829_v61 }
 0x1a4   : > { %2347 = vmatpush3.msra.mxu1 %v3045_v42 }
 0x1a5   : > { %2386 = vmatprep.subr.mxu1 %v2829_v61 }
 0x245   : > { %v670_v23 = vpop.f32.mrf.mxu1 }
 0x246   : > { %2767 = vlog2.f32 %v670_v23 }
 0x247   : > { %v2280_v24 = vpop.f32.mrf.mxu1 }
 0x253   : > { %v2768_v25 = vpop.eup %2767 }
 0x254   : > { %v675_v26 = vmul.f32 0.6931472, %v2768_v25 }
 0x256   : > { %v676_v27 = vadd.f32 %v675_v26, %v600_v19 }
 0x258   : > { %v677_v30 = vadd.f32 %v676_v27, %v3011_v55  ;;  %v1950_v27 = vld [vmem:[%s2997_s20 + $0x18] sm:$0xff] }
 0x25a   : > { %v678_v31 = vadd.f32 %v3201_v29, %v677_v30 }
 0x25c   : > { %v3209_v32 = vsel %vm594_vm2, %v678_v31, %v3083_v60 }
 0x25d   : > { %786 = vmax.xlane.f32.xlu1 %v3209_v32 }
 0x26e   : > { %467 = vperm.xlu1 %2764, %v465_v34  }
 0x272   : > { %779 = vperm.xlu1 %2764, %v777_v35  }
 0x276   : > { %497 = vperm.xlu1 %2764, %v1942_v36  }
 0x27a   : > { %684 = vperm.xlu1 %2764, %v1946_v37  }
 0x2e6   : > { %v3220_v38 = vpop.xlane.xlu1 %786 }
 0x2e7   : > { %v788_v39 = vsub.f32 %v3209_v32, %v3220_v38 }
 0x2e9   : > { %v789_v40 = vmul.f32 1.442695, %v788_v39 }
 0x2ea   : > { %v468_v41 = vpop.permute.xlu1 %467 }
 0x2eb   : > { %2769 = vpow2.f32 %v789_v40  ;;  %vm469_vm4 = vcmp.eq.s32.totalorder %v3004_v18, %v468_v41 }
 0x2ec   : > { %v3226_v60 = vsel %vm469_vm4, 1.0, %v2829_v61  ;;  %2799 = vmatmul.mubr.msk.f32.vlgmr.msra.gmra.mxu0 %vm469_vm4, %v2832_v16 }
 0x2ed   : > { %v480_v19 = vmul.f32 %v3002_v17, %v3226_v60  ;;  %2282 = vmatpush3.msra.mxu0 %v2979_v14  ;;  %2313 = vmatprep.mubr.msk.f32.mxu0 %vm2830_vm0, %v2829_v61 }
 0x2ee   : > { %v3231_v20 = vpop.permute.xlu1 %779  ;;  %2283 = vmatprep.subr.mxu0 %v2829_v61 }
 0x2ef   : > { %481 = vadd.xlane.f32.xlu0 %v480_v19  ;;  %2284 = vmatpush3.msra.mxu0 %v2984_v15  ;;  %vm781_vm8 = vcmp.eq.s32.totalorder %v3231_v20, 1 }
 0x2f0   : > { %2285 = vmatprep.subr.mxu0 %v2829_v61 }
 0x2f1   : > { %2286 = vmatpush3.msra.mxu0 %v2967_v12 }
 0x2f2   : > { %v498_v21 = vpop.permute.xlu1 %497  ;;  %2287 = vmatprep.subr.mxu0 %v2829_v61 }
 0x2f3   : > { %2288 = vmatpush3.msra.mxu0 %v2972_v13  ;;  %vm499_vm6 = vcmp.eq.s32.totalorder %v3004_v18, %v498_v21 }
 0x2f4   : > { %2289 = vmatprep.subr.mxu0 %v2829_v61  ;;  %v3299_v26 = vsel %vm499_vm6, 1.0, %v2829_v61 }
 0x2f5   : > { %2290 = vmatpush3.msra.mxu0 %v2955_v10 }
 0x2f6   : > { %v3243_v17 = vpop.permute.xlu1 %684  ;;  %2291 = vmatprep.subr.mxu0 %v2829_v61 }
 0x2f7   : > { %vm686_vm5 = vcmp.eq.s32.totalorder %v3004_v18, %v3243_v17  ;;  %2292 = vmatpush3.msra.mxu0 %v2960_v11 }
 0x2f8   : > { %v2770_v23 = vpop.eup %2769  ;;  %v3256_v24 = vsel %vm686_vm5, 1.0, %v2829_v61  ;;  %2293 = vmatprep.subr.mxu0 %v2829_v61 }
 0x2f9   : > { %2349 = vmatmul.mubr.f32.vlgmr.msra.gmra.mxu1 %v2770_v23  ;;  %v693_v25 = vmul.f32 %v3246_v22, %v3256_v24  ;;  %2294 = vmatpush3.msra.mxu0 %v2943_v8 }
 0x2fa   : > { %2387 = vmatpush3.msra.mxu1 %v3075_v58  ;;  %2295 = vmatprep.subr.mxu0 %v2829_v61 }
 0x2fb   : > { %694 = vadd.xlane.f32.xlu0 %v693_v25  ;;  %2296 = vmatpush3.msra.mxu0 %v2948_v9 }
 0x2fc   : > { %2388 = vmatprep.subr.mxu1 %v2829_v61  ;;  %2297 = vmatprep.subr.mxu0 %v2829_v61 }
 0x2fd   : > { %2389 = vmatpush3.msra.mxu1 %v3073_v57  ;;  %2298 = vmatpush3.msra.mxu0 %v2931_v6 }
 0x2fe   : > { %2390 = vmatprep.subr.mxu1 %v2829_v61  ;;  %2299 = vmatprep.subr.mxu0 %v2829_v61 }
 0x2ff   : > { %2391 = vmatpush3.msra.mxu1 %v3071_v56  ;;  %2300 = vmatpush3.msra.mxu0 %v2936_v7 }
 0x300   : > { %2392 = vmatprep.subr.mxu1 %v2829_v61  ;;  %2301 = vmatprep.subr.mxu0 %v2829_v61 }
 0x301   : > { %2393 = vmatpush3.msra.mxu1 %v3069_v54  ;;  %2302 = vmatpush3.msra.mxu0 %v2919_v4 }
 0x302   : > { %2394 = vmatprep.subr.mxu1 %v2829_v61  ;;  %2303 = vmatprep.subr.mxu0 %v2829_v61 }
 0x303   : > { %2395 = vmatpush3.msra.mxu1 %v3067_v53  ;;  %2304 = vmatpush3.msra.mxu0 %v2924_v5 }
 0x304   : > { %2396 = vmatprep.subr.mxu1 %v2829_v61  ;;  %2305 = vmatprep.subr.mxu0 %v2829_v61 }
 0x305   : > { %2397 = vmatpush3.msra.mxu1 %v3065_v52  ;;  %2306 = vmatpush3.msra.mxu0 %v2907_v2 }
 0x306   : > { %2398 = vmatprep.subr.mxu1 %v2829_v61  ;;  %2307 = vmatprep.subr.mxu0 %v2829_v61 }
 0x307   : > { %2399 = vmatpush3.msra.mxu1 %v3063_v51  ;;  %2308 = vmatpush3.msra.mxu0 %v2895_v0 }
 0x308   : > { %2400 = vmatprep.subr.mxu1 %v2829_v61  ;;  %2309 = vmatprep.subr.mxu0 %v2829_v61 }
 0x309   : > { %2401 = vmatpush3.msra.mxu1 %v3061_v50  ;;  %2310 = vmatpush3.msra.mxu0 %v2912_v3 }
 0x30a   : > { %2402 = vmatprep.subr.mxu1 %v2829_v61  ;;  %2311 = vmatprep.subr.mxu0 %v2829_v61 }
 0x30b   : > { %2403 = vmatpush3.msra.mxu1 %v3059_v49  ;;  %2312 = vmatpush3.msra.mxu0 %v2900_v1 }
 0x30c   : > { %2404 = vmatprep.subr.mxu1 %v2829_v61  ;;  %2800 = vmatmul.mubr.msk.f32.vlgmr.msra.gmra.mxu0 %vm499_vm6, %v2832_v16 }
 0x30d   : > { %2351 = vmatprep.subr.mxu0 %v2829_v61  ;;  %2383 = vmatprep.mubr.msk.f32.mxu0 %vm2830_vm0, %v2829_v61 }
 0x30e   : > { %2352 = vmatpush3.msra.mxu0 %v2979_v14  ;;  %2405 = vmatpush3.msra.mxu1 %v3057_v48 }
 0x30f   : > { %2353 = vmatprep.subr.mxu0 %v2829_v61  ;;  %2406 = vmatprep.subr.mxu1 %v2829_v61 }
 0x310   : > { %2354 = vmatpush3.msra.mxu0 %v2984_v15  ;;  %2407 = vmatpush3.msra.mxu1 %v3055_v47 }
 0x311   : > { %871 = vperm.xlu0 %2763, %v1950_v27   ;;  %2355 = vmatprep.subr.mxu0 %v2829_v61  ;;  %v483_v27 = vmul.f32 %v3226_v60, %v3079_v59 }
 0x312   : > { %2356 = vmatpush3.msra.mxu0 %v2967_v12  ;;  %2408 = vmatprep.subr.mxu1 %v2829_v61 }
 0x313   : > { %2357 = vmatprep.subr.mxu0 %v2829_v61  ;;  %2409 = vmatpush3.msra.mxu1 %v3053_v46 }
 0x314   : > { %2358 = vmatpush3.msra.mxu0 %v2972_v13  ;;  %2410 = vmatprep.subr.mxu1 %v2829_v61 }
 0x315   : > { %2359 = vmatprep.subr.mxu0 %v2829_v61  ;;  %2411 = vmatpush3.msra.mxu1 %v3051_v45 }
 0x316   : > { %2360 = vmatpush3.msra.mxu0 %v2955_v10  ;;  %2412 = vmatprep.subr.mxu1 %v2829_v61 }
 0x317   : > { %2361 = vmatprep.subr.mxu0 %v2829_v61  ;;  %2413 = vmatpush3.msra.mxu1 %v3049_v44 }
 0x318   : > { %2362 = vmatpush3.msra.mxu0 %v2960_v11  ;;  %2414 = vmatprep.subr.mxu1 %v2829_v61 }
 0x319   : > { %2363 = vmatprep.subr.mxu0 %v2829_v61  ;;  %2415 = vmatpush3.msra.mxu1 %v3047_v43 }
 0x31a   : > { %2364 = vmatpush3.msra.mxu0 %v2943_v8  ;;  %2416 = vmatprep.subr.mxu1 %v2829_v61 }
 0x31b   : > { %2365 = vmatprep.subr.mxu0 %v2829_v61  ;;  %2417 = vmatpush3.msra.mxu1 %v3045_v42 }
 0x31c   : > { %2366 = vmatpush3.msra.mxu0 %v2948_v9  ;;  %2418 = vmatprep.mubr.msk.f32.mxu1 %vm2830_vm0, %v2829_v61 }
 0x31d   : > { %2367 = vmatprep.subr.mxu0 %v2829_v61 }
 0x31e   : > { %2368 = vmatpush3.msra.mxu0 %v2931_v6 }
 0x31f   : > { %2369 = vmatprep.subr.mxu0 %v2829_v61 }
 0x320   : > { %2370 = vmatpush3.msra.mxu0 %v2936_v7 }
 0x321   : > { %2371 = vmatprep.subr.mxu0 %v2829_v61 }
 0x322   : > { %2372 = vmatpush3.msra.mxu0 %v2919_v4 }
 0x323   : > { %2373 = vmatprep.subr.mxu0 %v2829_v61 }
 0x324   : > { %2374 = vmatpush3.msra.mxu0 %v2924_v5 }
 0x325   : > { %2375 = vmatprep.subr.mxu0 %v2829_v61 }
 0x326   : > { %2376 = vmatpush3.msra.mxu0 %v2907_v2 }
 0x327   : > { %2377 = vmatprep.subr.mxu0 %v2829_v61 }
 0x328   : > { %2378 = vmatpush3.msra.mxu0 %v2895_v0 }
 0x329   : > { %2379 = vmatprep.subr.mxu0 %v2829_v61 }
 0x32a   : > { %2380 = vmatpush3.msra.mxu0 %v2912_v3 }
 0x32b   : > { %2381 = vmatprep.subr.mxu0 %v2829_v61 }
 0x32c   : > { %2382 = vmatpush3.msra.mxu0 %v2900_v1 }
 0x32d   : > { %2801 = vmatmul.mubr.msk.f32.vlgmr.msra.gmra.mxu0 %vm686_vm5, %v2832_v16 }
 0x378   : > { %v482_v30 = vpop.xlane.xlu0 %481 }
 0x384   : > { %v695_v31 = vpop.xlane.xlu0 %694 }
 0x38c   : > { %v872_v34 = vpop.permute.xlu0 %871 }
 0x38d   : > { %vm873_vm7 = vcmp.eq.s32.totalorder %v3004_v18, %v872_v34 }
 0x38e   : > { %v3360_v35 = vsel %vm873_vm7, 1.0, %v2829_v61 }
 0x38f   : > { %971 = vst [vmem:[#allocation5] sm:$0xff] %v3360_v35 }
 0x3ac   : > { %v576_v36 = vpop.f32.mrf.mxu0 }
 0x3ae   : > { %v2245_v37 = vpop.f32.mrf.mxu0 }
 0x3af   : > { %v1953_v37 = vld [vmem:[%s2992_s17 + $0x18] sm:$0xff] }
 0x3b9   : > { %v857_v39 = vpop.f32.mrf.mxu1 }
 0x3ba   : > { %2771 = vlog2.f32 %v857_v39 }
 0x3bb   : > { %v2350_v40 = vpop.f32.mrf.mxu1 }
 0x3c7   : > { %v2772_v41 = vpop.eup %2771 }
 0x3c8   : > { %v862_v19 = vmul.f32 0.6931472, %v2772_v41  ;;  %v1952_v41 = vld [vmem:[%s3009_s29 + $0x18] sm:$0xff] }
 0x3c9   : > { %vm962_vm9 = vcmp.gt.f32.partialorder %v1952_v41, 0.0 }
 0x3ca   : > { %v863_v16 = vadd.f32 %v862_v19, %v3220_v38  ;;  %v506_v38 = vmul.f32 %v3201_v29, %v3299_v26  ;;  %v964_v29 = vsel %vm962_vm9, 1, %v2831_v63 }
 0x3cc   : > { %v864_v21 = vadd.f32 %v863_v16, %v3011_v55  ;;  %v763_v17 = vpop.f32.mrf.mxu0  ;;  %v473_v16 = vld [vmem:[%s3009_s29] sm:$0xff] }
 0x3cd   : > { %v767_v34 = vmul.f32 %v3256_v24, %v763_v17 }
 0x3ce   : > { %v865_v23 = vadd.f32 %v3246_v22, %v864_v21  ;;  %v2315_v61 = vpop.f32.mrf.mxu0  ;;  %v580_v22 = vmul.f32 %v3299_v26, %v576_v36 }
 0x3d0   : > { %v3370_v25 = vsel %vm781_vm8, %v865_v23, %v3209_v32  ;;  %v880_v32 = vmul.f32 %v1953_v37, %v3360_v35 }
 0x3d1   : > { %973 = vmax.xlane.f32.xlu1 %v3370_v25 }
 0x3d5   : > { %484 = vadd.xlane.f32.xlu1 %v483_v27 }
 0x3d9   : > { %507 = vadd.xlane.f32.xlu1 %v506_v38 }
 0x3dd   : > { %581 = vadd.xlane.f32.xlu1 %v580_v22 }
 0x3e1   : > { %768 = vadd.xlane.f32.xlu1 %v767_v34 }
 0x3e5   : > { %881 = vadd.xlane.f32.xlu1 %v880_v32 }
 0x3ed   : > { %v950_v39 = vpop.f32.mrf.mxu0 }
 0x3ee   : > { %v954_v40 = vmul.f32 %v3360_v35, %v950_v39 }
 0x3ef   : > { %v2385_v59 = vpop.f32.mrf.mxu0 }
 0x3f0   : > { %955 = vadd.xlane.f32.xlu1 %v954_v40 }
 0x401   : > { %966 = vperm.xlu1 %2764, %v964_v29  }
 0x45a   : > { %v974_v36 = vpop.xlane.xlu1 %973 }
 0x45b   : > { %v975_v19 = vsub.f32 %v3370_v25, %v974_v36 }
 0x45d   : > { %v976_v21 = vmul.f32 1.442695, %v975_v19 }
 0x45e   : > { %v485_v17 = vpop.xlane.xlu1 %484 }
 0x45f   : > { %2773 = vpow2.f32 %v976_v21  ;;  %v486_v23 = vmul.f32 %v485_v17, %v473_v16 }
 0x461   : > { %v487_v61 = vadd.f32 %v486_v23, %v482_v30 }
 0x462   : > { %v508_v27 = vpop.xlane.xlu1 %507 }
 0x463   : > { %489 = vst.msk [vmem:[#allocation2] sm:$0xff] %vm488_vm10, %v487_v61 }
 0x466   : > { %v582_v38 = vpop.xlane.xlu1 %581 }
 0x467   : > { %v584_v22 = vadd.f32 %v582_v38, %v508_v27 }
 0x469   : > { %v585_v34 = vmul.f32 %v3148_v62, %v584_v22  ;;  %v595_v62 = vsel %vm594_vm2, %v3299_v26, %v3226_v60 }
 0x46a   : > { %v583_v32 = vld [vmem:[#allocation2] sm:$0xff]  ;;  %v769_v40 = vpop.xlane.xlu1 %768 }
 0x46b   : > { %v586_v63 = vadd.f32 %v585_v34, %v583_v32  ;;  %v771_v59 = vadd.f32 %v769_v40, %v695_v31  ;;  %v782_v31 = vsel %vm781_vm8, %v3256_v24, %v595_v62 }
 0x46c   : > { %v2774_v39 = vpop.eup %2773 }
 0x46d   : > { %587 = vst.msk [vmem:[#allocation2] sm:$0xff] %vm488_vm10, %v586_v63  ;;  %2419 = vmatmul.mubr.f32.vlgmr.msra.gmra.mxu1 %v2774_v39  ;;  %v772_v29 = vmul.f32 %v3213_v33, %v771_v59 }
 0x46e   : > { %v882_v30 = vpop.xlane.xlu1 %881 }
 0x474   : > { %v770_v19 = vld [vmem:[#allocation2] sm:$0xff] }
 0x475   : > { %v773_v16 = vadd.f32 %v772_v29, %v770_v19 }
 0x477   : > { %774 = vst.msk [vmem:[#allocation2] sm:$0xff] %vm488_vm10, %v773_v16 }
 0x479   : > { %v956_v21 = vpop.xlane.xlu1 %955 }
 0x47a   : > { %v958_v17 = vadd.f32 %v956_v21, %v882_v30 }
 0x47c   : > { %v959_v23 = vmul.f32 %v1952_v41, %v958_v17 }
 0x47d   : > { %v967_v61 = vpop.permute.xlu1 %966 }
 0x47e   : > { %v957_v27 = vld [vmem:[#allocation2] sm:$0xff]  ;;  %vm968_vm11 = vcmp.eq.s32.totalorder %v967_v61, 1 }
 0x47f   : > { %v960_v33 = vadd.f32 %v959_v23, %v957_v27  ;;  %v969_v38 = vsel %vm968_vm11, %v3360_v35, %v782_v31 }
 0x480   : > { %970 = vst [vmem:[#allocation4] sm:$0xff] %v969_v38 }
 0x481   : > { %961 = vst.msk [vmem:[#allocation2] sm:$0xff] %vm488_vm10, %v960_v33 }
 0x52d   : > { %v1044_v22 = vpop.f32.mrf.mxu1 }
 0x52e   : > { %2775 = vlog2.f32 %v1044_v22 }
 0x52f   : > { %v2420_v34 = vpop.f32.mrf.mxu1 }
 0x53b   : > { %v2776_v32 = vpop.eup %2775 }
 0x53c   : > { %v1049_v28 = vmul.f32 0.6931472, %v2776_v32 }
 0x53e   : > { %v1050_v60 = vadd.f32 %v1049_v28, %v974_v36 }
 0x540   : > { %v1051_v26 = vadd.f32 %v1050_v60, %v3011_v55 }
 0x542   : > { %v1052_v41 = vadd.f32 %v1953_v37, %v1051_v26 }
 0x544   : > { %v1053_v20 = vsel %vm968_vm11, %v1052_v41, %v3370_v25 }
 0x545   : > { %1054 = vst [vmem:[#allocation3] sm:$0xff] %v1053_v20 }
 0x546 PF: > { %p1954_p6 = scmp.le.s32.totalorder %s2819_s21, 0 }
 0x548   : > { %1058 = sbr.rel (%p1954_p6) target bundleno = 2847 (0xb1f), region = 52 }
 0x54d   : > { %v3403_v24 = vld [vmem:[#allocation3] sm:$0xff]  ;;  %v2833_v35 = vmov 0.0   ;;  %v2834_v63 = vmov 0   ;;  %v3432_v25 = vld [vmem:[%s3009_s29] sm:$0xff]  ;;  %vm2835_vm13 = vmmov 0   ;;  %v1071_v39 = vld [vmem:[#allocation5] sm:$0xff] }
 0x54e   : > { %1162 = vmax.xlane.f32.xlu0 %v3403_v24  ;;  %2421 = vmatprep.subr.mxu0 %v2833_v35  ;;  %vm1151_vm12 = vcmp.gt.f32.partialorder %v3432_v25, 0.0  ;;  %v1059_v36 = vld [vmem:[%s2997_s20] sm:$0xff]  ;;  %v3475_v40 = vld [vmem:[%s3009_s29 + $0x10] sm:$0xff]  ;;  %v1956_v29 = vld [vmem:[%s2997_s20 + $0x8] sm:$0xff]  ;;  %v2836_v23 = vmov 1.0   ;;  %vm1149_vm8 = vcmask 7168  }
 0x54f   : > { %2777 = vset.pattern.permute.xlu0 %v2834_v63  ;;  %2422 = vmatpush3.msra.mxu0 %v2979_v14  ;;  %v1153_v37 = vsel %vm1151_vm12, 1, %v2834_v63  ;;  %vm1525_vm14 = vcmp.gt.f32.partialorder %v3475_v40, 0.0 }
 0x550   : > { %2423 = vmatprep.subr.mxu0 %v2833_v35  ;;  %2456 = vmatprep.subr.mxu1 %v2833_v35  ;;  %v1527_v59 = vsel %vm1525_vm14, 1, %v2834_v63 }
 0x551   : > { %2424 = vmatpush3.msra.mxu0 %v2984_v15  ;;  %2457 = vmatpush3.msra.mxu1 %v3075_v58 }
 0x552   : > { %2425 = vmatprep.subr.mxu0 %v2833_v35  ;;  %2458 = vmatprep.subr.mxu1 %v2833_v35 }
 0x553   : > { %2426 = vmatpush3.msra.mxu0 %v2967_v12  ;;  %2459 = vmatpush3.msra.mxu1 %v3073_v57 }
 0x554   : > { %2427 = vmatprep.subr.mxu0 %v2833_v35  ;;  %2460 = vmatprep.subr.mxu1 %v2833_v35 }
 0x555   : > { %2428 = vmatpush3.msra.mxu0 %v2972_v13  ;;  %2461 = vmatpush3.msra.mxu1 %v3071_v56 }
 0x556   : > { %2429 = vmatprep.subr.mxu0 %v2833_v35  ;;  %2462 = vmatprep.subr.mxu1 %v2833_v35 }
 0x557   : > { %2430 = vmatpush3.msra.mxu0 %v2955_v10  ;;  %2463 = vmatpush3.msra.mxu1 %v3069_v54 }
 0x558   : > { %2431 = vmatprep.subr.mxu0 %v2833_v35  ;;  %2464 = vmatprep.subr.mxu1 %v2833_v35 }
 0x559   : > { %2432 = vmatpush3.msra.mxu0 %v2960_v11  ;;  %2465 = vmatpush3.msra.mxu1 %v3067_v53 }
 0x55a   : > { %2433 = vmatprep.subr.mxu0 %v2833_v35  ;;  %2466 = vmatprep.subr.mxu1 %v2833_v35 }
 0x55b   : > { %2434 = vmatpush3.msra.mxu0 %v2943_v8  ;;  %2467 = vmatpush3.msra.mxu1 %v3065_v52 }
 0x55c   : > { %2435 = vmatprep.subr.mxu0 %v2833_v35  ;;  %2468 = vmatprep.subr.mxu1 %v2833_v35 }
 0x55d   : > { %2436 = vmatpush3.msra.mxu0 %v2948_v9  ;;  %2469 = vmatpush3.msra.mxu1 %v3063_v51 }
 0x55e   : > { %2437 = vmatprep.subr.mxu0 %v2833_v35  ;;  %2470 = vmatprep.subr.mxu1 %v2833_v35 }
 0x55f   : > { %2438 = vmatpush3.msra.mxu0 %v2931_v6  ;;  %2471 = vmatpush3.msra.mxu1 %v3061_v50 }
 0x560   : > { %2439 = vmatprep.subr.mxu0 %v2833_v35  ;;  %2472 = vmatprep.subr.mxu1 %v2833_v35 }
 0x561   : > { %2440 = vmatpush3.msra.mxu0 %v2936_v7  ;;  %2473 = vmatpush3.msra.mxu1 %v3059_v49 }
 0x562   : > { %2441 = vmatprep.subr.mxu0 %v2833_v35  ;;  %2474 = vmatprep.subr.mxu1 %v2833_v35 }
 0x563   : > { %2442 = vmatpush3.msra.mxu0 %v2919_v4  ;;  %2475 = vmatpush3.msra.mxu1 %v3057_v48 }
 0x564   : > { %1155 = vperm.xlu0 %2777, %v1153_v37   ;;  %2443 = vmatprep.subr.mxu0 %v2833_v35 }
 0x565   : > { %2444 = vmatpush3.msra.mxu0 %v2924_v5  ;;  %2476 = vmatprep.subr.mxu1 %v2833_v35 }
 0x566   : > { %2445 = vmatprep.subr.mxu0 %v2833_v35  ;;  %2477 = vmatpush3.msra.mxu1 %v3055_v47 }
 0x567   : > { %2446 = vmatpush3.msra.mxu0 %v2907_v2  ;;  %2478 = vmatprep.subr.mxu1 %v2833_v35 }
 0x568   : > { %1061 = vperm.xlu0 %2777, %v1059_v36   ;;  %2447 = vmatprep.subr.mxu0 %v2833_v35 }
 0x569   : > { %2448 = vmatpush3.msra.mxu0 %v2895_v0  ;;  %2453 = vmatprep.mubr.msk.f32.mxu0 %vm2835_vm13, %v2833_v35 }
 0x56a   : > { %2449 = vmatprep.subr.mxu0 %v2833_v35  ;;  %2479 = vmatpush3.msra.mxu1 %v3053_v46 }
 0x56b   : > { %2450 = vmatpush3.msra.mxu0 %v2912_v3  ;;  %2480 = vmatprep.subr.mxu1 %v2833_v35 }
 0x56c   : > { %2451 = vmatprep.subr.mxu0 %v2833_v35  ;;  %2481 = vmatpush3.msra.mxu1 %v3051_v45 }
 0x56d   : > { %2452 = vmatpush3.msra.mxu0 %v2900_v1  ;;  %2482 = vmatprep.subr.mxu1 %v2833_v35 }
 0x56e   : > { %2491 = vmatprep.subr.mxu0 %v2833_v35  ;;  %2454 = vmatmul.mubr.f32.vlgmr.msra.gmra.mxu0 %v1071_v39  ;;  %v3702_v39 = vld [vmem:[%s2992_s17 + $0x8] sm:$0xff] }
 0x56f   : > { %2492 = vmatpush3.msra.mxu0 %v2979_v14  ;;  %2483 = vmatpush3.msra.mxu1 %v3049_v44 }
 0x570   : > { %2493 = vmatprep.subr.mxu0 %v2833_v35  ;;  %2484 = vmatprep.subr.mxu1 %v2833_v35 }
 0x571   : > { %2494 = vmatpush3.msra.mxu0 %v2984_v15  ;;  %2485 = vmatpush3.msra.mxu1 %v3047_v43 }
 0x572   : > { %2495 = vmatprep.subr.mxu0 %v2833_v35  ;;  %2486 = vmatprep.subr.mxu1 %v2833_v35 }
 0x573   : > { %2496 = vmatpush3.msra.mxu0 %v2967_v12  ;;  %2487 = vmatpush3.msra.mxu1 %v3045_v42 }
 0x574   : > { %2497 = vmatprep.subr.mxu0 %v2833_v35  ;;  %2488 = vmatprep.mubr.msk.f32.mxu1 %vm2835_vm13, %v2833_v35 }
 0x575   : > { %2498 = vmatpush3.msra.mxu0 %v2972_v13  ;;  %2523 = vmatprep.mubr.msk.f32.mxu0 %vm2835_vm13, %v2833_v35 }
 0x576   : > { %2499 = vmatprep.subr.mxu0 %v2833_v35  ;;  %1529 = vperm.xlu0 %2777, %v1527_v59  }
 0x577   : > { %2500 = vmatpush3.msra.mxu0 %v2955_v10  ;;  %2778 = vset.pattern.permute.xlu1 %v2834_v63 }
 0x578   : > { %2501 = vmatprep.subr.mxu0 %v2833_v35  ;;  %2526 = vmatprep.subr.mxu1 %v2833_v35 }
 0x579   : > { %2502 = vmatpush3.msra.mxu0 %v2960_v11 }
 0x57a   : > { %2503 = vmatprep.subr.mxu0 %v2833_v35  ;;  %1247 = vperm.xlu0 %2777, %v1956_v29  }
 0x57b   : > { %2504 = vmatpush3.msra.mxu0 %v2943_v8 }
 0x57c   : > { %2505 = vmatprep.subr.mxu0 %v2833_v35 }
 0x57d   : > { %2506 = vmatpush3.msra.mxu0 %v2948_v9 }
 0x57e   : > { %2507 = vmatprep.subr.mxu0 %v2833_v35 }
 0x57f   : > { %2508 = vmatpush3.msra.mxu0 %v2931_v6 }
 0x580   : > { %2509 = vmatprep.subr.mxu0 %v2833_v35 }
 0x581   : > { %2510 = vmatpush3.msra.mxu0 %v2936_v7 }
 0x582   : > { %2511 = vmatprep.subr.mxu0 %v2833_v35 }
 0x583   : > { %2512 = vmatpush3.msra.mxu0 %v2919_v4 }
 0x584   : > { %2513 = vmatprep.subr.mxu0 %v2833_v35 }
 0x585   : > { %2514 = vmatpush3.msra.mxu0 %v2924_v5 }
 0x586   : > { %2515 = vmatprep.subr.mxu0 %v2833_v35 }
 0x587   : > { %2516 = vmatpush3.msra.mxu0 %v2907_v2 }
 0x588   : > { %2517 = vmatprep.subr.mxu0 %v2833_v35 }
 0x589   : > { %2518 = vmatpush3.msra.mxu0 %v2895_v0 }
 0x58a   : > { %2519 = vmatprep.subr.mxu0 %v2833_v35 }
 0x58b   : > { %2520 = vmatpush3.msra.mxu0 %v2912_v3 }
 0x58c   : > { %2521 = vmatprep.subr.mxu0 %v2833_v35 }
 0x58d   : > { %2522 = vmatpush3.msra.mxu0 %v2900_v1 }
 0x58e   : > { %2561 = vmatprep.subr.mxu0 %v2833_v35 }
 0x5d7   : > { %v3524_v19 = vpop.xlane.xlu0 %1162 }
 0x5d8   : > { %v1164_v16 = vsub.f32 %v3403_v24, %v3524_v19 }
 0x5da   : > { %v1165_v30 = vmul.f32 1.442695, %v1164_v16 }
 0x5dc   : > { %2779 = vpow2.f32 %v1165_v30  ;;  %v1964_v30 = vld [vmem:[%s2997_s20 + $0x18] sm:$0xff] }
 0x5df   : > { %v3528_v21 = vpop.permute.xlu0 %1155 }
 0x5e0   : > { %vm1157_vm1 = vcmp.eq.s32.totalorder %v3528_v21, 1 }
 0x5e3   : > { %v1062_v17 = vpop.permute.xlu0 %1061 }
 0x5e4   : > { %vm1063_vm15 = vcmp.eq.s32.totalorder %v3004_v18, %v1062_v17 }
 0x5e5   : > { %v3532_v62 = vsel %vm1063_vm15, 1.0, %v2833_v35  ;;  %2802 = vmatmul.mubr.msk.f32.vlgmr.msra.gmra.mxu0 %vm1063_vm15, %v2836_v23 }
 0x5e6   : > { %2562 = vmatpush3.msra.mxu0 %v2979_v14  ;;  %2593 = vmatprep.mubr.msk.f32.mxu0 %vm2835_vm13, %v2833_v35 }
 0x5e7   : > { %2563 = vmatprep.subr.mxu0 %v2833_v35 }
 0x5e8   : > { %2564 = vmatpush3.msra.mxu0 %v2984_v15 }
 0x5e9   : > { %v2780_v61 = vpop.eup %2779  ;;  %2565 = vmatprep.subr.mxu0 %v2833_v35 }
 0x5ea   : > { %2489 = vmatmul.mubr.f32.vlgmr.msra.gmra.mxu1 %v2780_v61  ;;  %2566 = vmatpush3.msra.mxu0 %v2967_v12 }
 0x5eb   : > { %2527 = vmatpush3.msra.mxu1 %v3075_v58  ;;  %2567 = vmatprep.subr.mxu0 %v2833_v35 }
 0x5ec   : > { %2528 = vmatprep.subr.mxu1 %v2833_v35  ;;  %2568 = vmatpush3.msra.mxu0 %v2972_v13 }
 0x5ed   : > { %2529 = vmatpush3.msra.mxu1 %v3073_v57  ;;  %2569 = vmatprep.subr.mxu0 %v2833_v35 }
 0x5ee   : > { %2530 = vmatprep.subr.mxu1 %v2833_v35  ;;  %2570 = vmatpush3.msra.mxu0 %v2955_v10 }
 0x5ef   : > { %2531 = vmatpush3.msra.mxu1 %v3071_v56  ;;  %2571 = vmatprep.subr.mxu0 %v2833_v35 }
 0x5f0   : > { %2532 = vmatprep.subr.mxu1 %v2833_v35  ;;  %2572 = vmatpush3.msra.mxu0 %v2960_v11 }
 0x5f1   : > { %2533 = vmatpush3.msra.mxu1 %v3069_v54  ;;  %2573 = vmatprep.subr.mxu0 %v2833_v35  ;;  %v3603_v31 = vpop.permute.xlu0 %1529 }
 0x5f2   : > { %2534 = vmatprep.subr.mxu1 %v2833_v35  ;;  %2574 = vmatpush3.msra.mxu0 %v2943_v8  ;;  %vm1531_vm6 = vcmp.eq.s32.totalorder %v3603_v31, 1 }
 0x5f3   : > { %2535 = vmatpush3.msra.mxu1 %v3067_v53  ;;  %2575 = vmatprep.subr.mxu0 %v2833_v35 }
 0x5f4   : > { %2536 = vmatprep.subr.mxu1 %v2833_v35  ;;  %2576 = vmatpush3.msra.mxu0 %v2948_v9 }
 0x5f5   : > { %2537 = vmatpush3.msra.mxu1 %v3065_v52  ;;  %2577 = vmatprep.subr.mxu0 %v2833_v35  ;;  %v1248_v33 = vpop.permute.xlu0 %1247 }
 0x5f6   : > { %2538 = vmatprep.subr.mxu1 %v2833_v35  ;;  %2578 = vmatpush3.msra.mxu0 %v2931_v6  ;;  %vm1249_vm0 = vcmp.eq.s32.totalorder %v3004_v18, %v1248_v33 }
 0x5f7   : > { %2539 = vmatpush3.msra.mxu1 %v3063_v51  ;;  %2579 = vmatprep.subr.mxu0 %v2833_v35  ;;  %v3609_v38 = vsel %vm1249_vm0, 1.0, %v2833_v35 }
 0x5f8   : > { %2540 = vmatprep.subr.mxu1 %v2833_v35  ;;  %2580 = vmatpush3.msra.mxu0 %v2936_v7 }
 0x5f9   : > { %2541 = vmatpush3.msra.mxu1 %v3061_v50  ;;  %2581 = vmatprep.subr.mxu0 %v2833_v35 }
 0x5fa   : > { %2542 = vmatprep.subr.mxu1 %v2833_v35  ;;  %2582 = vmatpush3.msra.mxu0 %v2919_v4 }
 0x5fb   : > { %2543 = vmatpush3.msra.mxu1 %v3059_v49  ;;  %2583 = vmatprep.subr.mxu0 %v2833_v35 }
 0x5fc   : > { %2544 = vmatprep.subr.mxu1 %v2833_v35  ;;  %2584 = vmatpush3.msra.mxu0 %v2924_v5 }
 0x5fd   : > { %2545 = vmatpush3.msra.mxu1 %v3057_v48  ;;  %2585 = vmatprep.subr.mxu0 %v2833_v35 }
 0x5fe   : > { %2546 = vmatprep.subr.mxu1 %v2833_v35  ;;  %2586 = vmatpush3.msra.mxu0 %v2907_v2 }
 0x5ff   : > { %2547 = vmatpush3.msra.mxu1 %v3055_v47  ;;  %2587 = vmatprep.subr.mxu0 %v2833_v35 }
 0x600   : > { %2548 = vmatprep.subr.mxu1 %v2833_v35  ;;  %2588 = vmatpush3.msra.mxu0 %v2895_v0 }
 0x601   : > { %2549 = vmatpush3.msra.mxu1 %v3053_v46  ;;  %2589 = vmatprep.subr.mxu0 %v2833_v35 }
 0x602   : > { %2550 = vmatprep.subr.mxu1 %v2833_v35  ;;  %2590 = vmatpush3.msra.mxu0 %v2912_v3 }
 0x603   : > { %2551 = vmatpush3.msra.mxu1 %v3051_v45  ;;  %2591 = vmatprep.subr.mxu0 %v2833_v35 }
 0x604   : > { %2552 = vmatprep.subr.mxu1 %v2833_v35  ;;  %2592 = vmatpush3.msra.mxu0 %v2900_v1 }
 0x605   : > { %2553 = vmatpush3.msra.mxu1 %v3049_v44  ;;  %2558 = vmatprep.mubr.msk.f32.mxu1 %vm2835_vm13, %v2833_v35 }
 0x606   : > { %2554 = vmatprep.subr.mxu1 %v2833_v35  ;;  %2631 = vmatprep.subr.mxu0 %v2833_v35 }
 0x607   : > { %2555 = vmatpush3.msra.mxu1 %v3047_v43  ;;  %2803 = vmatmul.mubr.msk.f32.vlgmr.msra.gmra.mxu0 %vm1249_vm0, %v2836_v23 }
 0x608   : > { %2556 = vmatprep.subr.mxu1 %v2833_v35  ;;  %2632 = vmatpush3.msra.mxu0 %v2979_v14 }
 0x609   : > { %2557 = vmatpush3.msra.mxu1 %v3045_v42  ;;  %2663 = vmatprep.mubr.msk.f32.mxu0 %vm2835_vm13, %v2833_v35 }
 0x60a   : > { %2596 = vmatprep.subr.mxu1 %v2833_v35  ;;  %2633 = vmatprep.subr.mxu0 %v2833_v35 }
 0x60b   : > { %2634 = vmatpush3.msra.mxu0 %v2984_v15 }
 0x60c   : > { %2635 = vmatprep.subr.mxu0 %v2833_v35 }
 0x60d   : > { %2636 = vmatpush3.msra.mxu0 %v2967_v12 }
 0x60e   : > { %2637 = vmatprep.subr.mxu0 %v2833_v35 }
 0x60f   : > { %2638 = vmatpush3.msra.mxu0 %v2972_v13 }
 0x610   : > { %2639 = vmatprep.subr.mxu0 %v2833_v35 }
 0x611   : > { %2640 = vmatpush3.msra.mxu0 %v2955_v10 }
 0x612   : > { %2641 = vmatprep.subr.mxu0 %v2833_v35 }
 0x613   : > { %2642 = vmatpush3.msra.mxu0 %v2960_v11  ;;  %v3658_v11 = vld [vmem:[%s3009_s29 + $0x8] sm:$0xff] }
 0x614   : > { %2643 = vmatprep.subr.mxu0 %v2833_v35  ;;  %vm1338_vm2 = vcmp.gt.f32.partialorder %v3658_v11, 0.0 }
 0x615   : > { %2644 = vmatpush3.msra.mxu0 %v2943_v8  ;;  %v1340_v12 = vsel %vm1338_vm2, 1, %v2834_v63 }
 0x616   : > { %2645 = vmatprep.subr.mxu0 %v2833_v35 }
 0x617   : > { %2646 = vmatpush3.msra.mxu0 %v2948_v9 }
 0x618   : > { %2647 = vmatprep.subr.mxu0 %v2833_v35 }
 0x619   : > { %2648 = vmatpush3.msra.mxu0 %v2931_v6 }
 0x61a   : > { %2649 = vmatprep.subr.mxu0 %v2833_v35 }
 0x61b   : > { %2650 = vmatpush3.msra.mxu0 %v2936_v7 }
 0x61c   : > { %2651 = vmatprep.subr.mxu0 %v2833_v35 }
 0x61d   : > { %2652 = vmatpush3.msra.mxu0 %v2919_v4 }
 0x61e   : > { %2653 = vmatprep.subr.mxu0 %v2833_v35 }
 0x61f   : > { %2654 = vmatpush3.msra.mxu0 %v2924_v5 }
 0x620   : > { %2655 = vmatprep.subr.mxu0 %v2833_v35 }
 0x621   : > { %2656 = vmatpush3.msra.mxu0 %v2907_v2 }
 0x622   : > { %2657 = vmatprep.subr.mxu0 %v2833_v35 }
 0x623   : > { %2658 = vmatpush3.msra.mxu0 %v2895_v0  ;;  %v3649_v0 = vld [vmem:[%s2992_s17] sm:$0xff] }
 0x624   : > { %2659 = vmatprep.subr.mxu0 %v2833_v35  ;;  %v1068_v16 = vmul.f32 %v3532_v62, %v3649_v0 }
 0x625   : > { %2660 = vmatpush3.msra.mxu0 %v2912_v3 }
 0x626   : > { %2661 = vmatprep.subr.mxu0 %v2833_v35 }
 0x627   : > { %2662 = vmatpush3.msra.mxu0 %v2900_v1 }
 0x62e   : > { %v3605_v27 = vpop.f32.mrf.mxu0 }
 0x630   : > { %v2455_v22 = vpop.f32.mrf.mxu0 }
 0x6a5   : > { %v3645_v4 = vpop.f32.mrf.mxu0 }
 0x6a7   : > { %v2525_v5 = vpop.f32.mrf.mxu0 }
 0x6aa   : > { %v1233_v6 = vpop.f32.mrf.mxu1 }
 0x6ab   : > { %2781 = vlog2.f32 %v1233_v6 }
 0x6ac   : > { %v2490_v7 = vpop.f32.mrf.mxu1 }
 0x6ad   : > { %v1967_v7 = vld [vmem:[%s2992_s17 + $0x18] sm:$0xff] }
 0x6b8   : > { %v2782_v2 = vpop.eup %2781 }
 0x6b9   : > { %v1238_v8 = vmul.f32 0.6931472, %v2782_v2 }
 0x6bb   : > { %v1239_v9 = vadd.f32 %v1238_v8, %v3524_v19  ;;  %v1960_v19 = vld [vmem:[%s2997_s20 + $0x10] sm:$0xff]  ;;  %v1966_v8 = vld [vmem:[%s3009_s29 + $0x18] sm:$0xff] }
 0x6bc   : > { %vm1712_vm7 = vcmp.gt.f32.partialorder %v1966_v8, 0.0 }
 0x6bd   : > { %v1240_v10 = vadd.f32 %v1239_v9, %v3011_v55  ;;  %v1714_v9 = vsel %vm1712_vm7, 1, %v2834_v63 }
 0x6bf   : > { %v1241_v3 = vadd.f32 %v1240_v10, %v3649_v0 }
 0x6c1   : > { %v1242_v1 = vsel %vm1157_vm1, %v1241_v3, %v3403_v24 }
 0x6c2   : > { %1349 = vmax.xlane.f32.xlu1 %v1242_v1 }
 0x6c7   : > { %v3662_v13 = vpop.f32.mrf.mxu0 }
 0x6c9   : > { %v2595_v14 = vpop.f32.mrf.mxu0 }
 0x6d3   : > { %1342 = vperm.xlu1 %2778, %v1340_v12   ;;  %v1145_v12 = vld [vmem:[#allocation2] sm:$0xff] }
 0x74b   : > { %v1350_v15 = vpop.xlane.xlu1 %1349 }
 0x74c   : > { %v1351_v34 = vsub.f32 %v1242_v1, %v1350_v15 }
 0x74e   : > { %v1352_v32 = vmul.f32 1.442695, %v1351_v34 }
 0x74f   : > { %v3698_v37 = vpop.permute.xlu1 %1342 }
 0x750   : > { %2783 = vpow2.f32 %v1352_v32  ;;  %vm1344_vm3 = vcmp.eq.s32.totalorder %v3698_v37, 1 }
 0x75d   : > { %v2784_v28 = vpop.eup %2783 }
 0x75e   : > { %2559 = vmatmul.mubr.f32.vlgmr.msra.gmra.mxu1 %v2784_v28 }
 0x75f   : > { %2597 = vmatpush3.msra.mxu1 %v3075_v58  ;;  %2628 = vmatprep.mubr.msk.f32.mxu1 %vm2835_vm13, %v2833_v35 }
 0x760   : > { %2598 = vmatprep.subr.mxu1 %v2833_v35 }
 0x761   : > { %2599 = vmatpush3.msra.mxu1 %v3073_v57 }
 0x762   : > { %2600 = vmatprep.subr.mxu1 %v2833_v35 }
 0x763   : > { %2601 = vmatpush3.msra.mxu1 %v3071_v56 }
 0x764   : > { %2602 = vmatprep.subr.mxu1 %v2833_v35 }
 0x765   : > { %2603 = vmatpush3.msra.mxu1 %v3069_v54 }
 0x766   : > { %2604 = vmatprep.subr.mxu1 %v2833_v35 }
 0x767   : > { %2605 = vmatpush3.msra.mxu1 %v3067_v53 }
 0x768   : > { %2606 = vmatprep.subr.mxu1 %v2833_v35 }
 0x769   : > { %2607 = vmatpush3.msra.mxu1 %v3065_v52 }
 0x76a   : > { %2608 = vmatprep.subr.mxu1 %v2833_v35 }
 0x76b   : > { %2609 = vmatpush3.msra.mxu1 %v3063_v51 }
 0x76c   : > { %2610 = vmatprep.subr.mxu1 %v2833_v35 }
 0x76d   : > { %2611 = vmatpush3.msra.mxu1 %v3061_v50 }
 0x76e   : > { %2612 = vmatprep.subr.mxu1 %v2833_v35 }
 0x76f   : > { %2613 = vmatpush3.msra.mxu1 %v3059_v49 }
 0x770   : > { %2614 = vmatprep.subr.mxu1 %v2833_v35 }
 0x771   : > { %2615 = vmatpush3.msra.mxu1 %v3057_v48 }
 0x772   : > { %2616 = vmatprep.subr.mxu1 %v2833_v35 }
 0x773   : > { %2617 = vmatpush3.msra.mxu1 %v3055_v47 }
 0x774   : > { %2618 = vmatprep.subr.mxu1 %v2833_v35 }
 0x775   : > { %2619 = vmatpush3.msra.mxu1 %v3053_v46 }
 0x776   : > { %2620 = vmatprep.subr.mxu1 %v2833_v35 }
 0x777   : > { %2621 = vmatpush3.msra.mxu1 %v3051_v45 }
 0x778   : > { %2622 = vmatprep.subr.mxu1 %v2833_v35 }
 0x779   : > { %2623 = vmatpush3.msra.mxu1 %v3049_v44 }
 0x77a   : > { %2624 = vmatprep.subr.mxu1 %v2833_v35 }
 0x77b   : > { %2625 = vmatpush3.msra.mxu1 %v3047_v43 }
 0x77c   : > { %2626 = vmatprep.subr.mxu1 %v2833_v35 }
 0x77d   : > { %2627 = vmatpush3.msra.mxu1 %v3045_v42 }
 0x77e   : > { %2666 = vmatprep.subr.mxu1 %v2833_v35 }
 0x81e   : > { %v1420_v60 = vpop.f32.mrf.mxu1 }
 0x81f   : > { %2785 = vlog2.f32 %v1420_v60 }
 0x820   : > { %v2560_v26 = vpop.f32.mrf.mxu1 }
 0x82c   : > { %v2786_v41 = vpop.eup %2785 }
 0x82d   : > { %v1425_v20 = vmul.f32 0.6931472, %v2786_v41 }
 0x82f   : > { %v1426_v24 = vadd.f32 %v1425_v20, %v1350_v15 }
 0x831   : > { %v1427_v36 = vadd.f32 %v1426_v24, %v3011_v55 }
 0x833   : > { %v1428_v59 = vadd.f32 %v3702_v39, %v1427_v36 }
 0x835   : > { %v3708_v29 = vsel %vm1344_vm3, %v1428_v59, %v1242_v1 }
 0x836   : > { %1536 = vmax.xlane.f32.xlu1 %v3708_v29 }
 0x847   : > { %1434 = vperm.xlu1 %2778, %v1960_v19   ;;  %v1152_v19 = vld [vmem:[#allocation4] sm:$0xff] }
 0x86b   : > { %1069 = vadd.xlane.f32.xlu1 %v1068_v16 }
 0x87c   : > { %1621 = vperm.xlu1 %2778, %v1964_v30  }
 0x8bf   : > { %v1537_v17 = vpop.xlane.xlu1 %1536 }
 0x8c0   : > { %v1538_v61 = vsub.f32 %v3708_v29, %v1537_v17 }
 0x8c2   : > { %v1539_v33 = vmul.f32 1.442695, %v1538_v61 }
 0x8c3   : > { %v1435_v22 = vpop.permute.xlu1 %1434 }
 0x8c4   : > { %2787 = vpow2.f32 %v1539_v33  ;;  %vm1436_vm4 = vcmp.eq.s32.totalorder %v3004_v18, %v1435_v22 }
 0x8c5   : > { %v3718_v5 = vsel %vm1436_vm4, 1.0, %v2833_v35  ;;  %2804 = vmatmul.mubr.msk.f32.vlgmr.msra.gmra.mxu0 %vm1436_vm4, %v2836_v23 }
 0x8c6   : > { %v1517_v23 = vmul.f32 %v3718_v5, %v3662_v13 }
 0x8d1   : > { %v2788_v6 = vpop.eup %2787 }
 0x8d2   : > { %2629 = vmatmul.mubr.f32.vlgmr.msra.gmra.mxu1 %v2788_v6 }
 0x8d3   : > { %2667 = vmatpush3.msra.mxu1 %v3075_v58  ;;  %2698 = vmatprep.mubr.msk.f32.mxu1 %vm2835_vm13, %v2833_v35  ;;  %v1330_v58 = vmul.f32 %v3609_v38, %v3645_v4 }
 0x8d4   : > { %2668 = vmatprep.subr.mxu1 %v2833_v35 }
 0x8d5   : > { %2669 = vmatpush3.msra.mxu1 %v3073_v57  ;;  %v1256_v57 = vmul.f32 %v3702_v39, %v3609_v38 }
 0x8d6   : > { %2670 = vmatprep.subr.mxu1 %v2833_v35 }
 0x8d7   : > { %2671 = vmatpush3.msra.mxu1 %v3071_v56  ;;  %v1142_v56 = vmul.f32 %v3532_v62, %v3605_v27 }
 0x8d8   : > { %2672 = vmatprep.subr.mxu1 %v2833_v35 }
 0x8d9   : > { %2673 = vmatpush3.msra.mxu1 %v3069_v54 }
 0x8da   : > { %2674 = vmatprep.subr.mxu1 %v2833_v35 }
 0x8db   : > { %2675 = vmatpush3.msra.mxu1 %v3067_v53  ;;  %v1963_v53 = vld [vmem:[%s2992_s17 + $0x10] sm:$0xff] }
 0x8dc   : > { %2676 = vmatprep.subr.mxu1 %v2833_v35 }
 0x8dd   : > { %2677 = vmatpush3.msra.mxu1 %v3065_v52 }
 0x8de   : > { %2678 = vmatprep.subr.mxu1 %v2833_v35 }
 0x8df   : > { %2679 = vmatpush3.msra.mxu1 %v3063_v51 }
 0x8e0   : > { %2680 = vmatprep.subr.mxu1 %v2833_v35 }
 0x8e1   : > { %2681 = vmatpush3.msra.mxu1 %v3061_v50 }
 0x8e2   : > { %2682 = vmatprep.subr.mxu1 %v2833_v35 }
 0x8e3   : > { %2683 = vmatpush3.msra.mxu1 %v3059_v49 }
 0x8e4   : > { %2684 = vmatprep.subr.mxu1 %v2833_v35 }
 0x8e5   : > { %2685 = vmatpush3.msra.mxu1 %v3057_v48 }
 0x8e6   : > { %2686 = vmatprep.subr.mxu1 %v2833_v35 }
 0x8e7   : > { %2687 = vmatpush3.msra.mxu1 %v3055_v47 }
 0x8e8   : > { %2688 = vmatprep.subr.mxu1 %v2833_v35 }
 0x8e9   : > { %2689 = vmatpush3.msra.mxu1 %v3053_v46 }
 0x8ea   : > { %2690 = vmatprep.subr.mxu1 %v2833_v35 }
 0x8eb   : > { %2691 = vmatpush3.msra.mxu1 %v3051_v45 }
 0x8ec   : > { %2692 = vmatprep.subr.mxu1 %v2833_v35 }
 0x8ed   : > { %2693 = vmatpush3.msra.mxu1 %v3049_v44 }
 0x8ee   : > { %2694 = vmatprep.subr.mxu1 %v2833_v35 }
 0x8ef   : > { %2695 = vmatpush3.msra.mxu1 %v3047_v43 }
 0x8f0   : > { %2696 = vmatprep.subr.mxu1 %v2833_v35 }
 0x8f1   : > { %2697 = vmatpush3.msra.mxu1 %v3045_v42 }
 0x8f4   : > { %v1070_v47 = vpop.xlane.xlu1 %1069 }
 0x8f8   : > { %v1622_v48 = vpop.permute.xlu1 %1621 }
 0x8f9   : > { %vm1623_vm5 = vcmp.eq.s32.totalorder %v3004_v18, %v1622_v48 }
 0x8fa   : > { %v3756_v46 = vsel %vm1623_vm5, 1.0, %v2833_v35  ;;  %v1443_v35 = vmul.f32 %v1963_v53, %v3718_v5 }
 0x8fb   : > { %1721 = vst [vmem:[#allocation5] sm:$0xff] %v3756_v46  ;;  %v1630_v2 = vmul.f32 %v1967_v7, %v3756_v46 }
 0x985   : > { %v1700_v45 = vpop.f32.mrf.mxu0 }
 0x986   : > { %v1704_v27 = vmul.f32 %v3756_v46, %v1700_v45 }
 0x987   : > { %v2665_v44 = vpop.f32.mrf.mxu0 }
 0x992   : > { %v1607_v49 = vpop.f32.mrf.mxu1 }
 0x993   : > { %2789 = vlog2.f32 %v1607_v49 }
 0x994   : > { %v2630_v50 = vpop.f32.mrf.mxu1 }
 0x9a0   : > { %v2790_v43 = vpop.eup %2789 }
 0x9a1   : > { %v1612_v51 = vmul.f32 0.6931472, %v2790_v43 }
 0x9a3   : > { %v1613_v52 = vadd.f32 %v1612_v51, %v1537_v17 }
 0x9a5   : > { %v1614_v42 = vadd.f32 %v1613_v52, %v3011_v55 }
 0x9a7   : > { %v1615_v54 = vadd.f32 %v1963_v53, %v1614_v42 }
 0x9a9   : > { %v3765_v18 = vsel %vm1531_vm6, %v1615_v54, %v3708_v29 }
 0x9aa   : > { %1723 = vmax.xlane.f32.xlu0 %v3765_v18 }
 0x9ae   : > { %1143 = vadd.xlane.f32.xlu0 %v1142_v56 }
 0x9b2   : > { %1257 = vadd.xlane.f32.xlu0 %v1256_v57 }
 0x9b6   : > { %1331 = vadd.xlane.f32.xlu0 %v1330_v58 }
 0x9ba   : > { %1444 = vadd.xlane.f32.xlu0 %v1443_v35 }
 0x9be   : > { %1518 = vadd.xlane.f32.xlu0 %v1517_v23 }
 0x9c2   : > { %1631 = vadd.xlane.f32.xlu0 %v1630_v2 }
 0x9c6   : > { %1705 = vadd.xlane.f32.xlu0 %v1704_v27 }
 0x9dc   : > { %1716 = vperm.xlu0 %2777, %v1714_v9  }
 0xa33   : > { %v1724_v4 = vpop.xlane.xlu0 %1723 }
 0xa34   : > { %v1725_v0 = vsub.f32 %v3765_v18, %v1724_v4 }
 0xa36   : > { %v1726_v10 = vmul.f32 1.442695, %v1725_v0 }
 0xa37   : > { %v1144_v3 = vpop.xlane.xlu0 %1143 }
 0xa38   : > { %2791 = vpow2.f32 %v1726_v10  ;;  %v1146_v1 = vadd.f32 %v1144_v3, %v1070_v47 }
 0xa3a   : > { %v1147_v13 = vmul.f32 %v1146_v1, %v3432_v25 }
 0xa3b   : > { %v1258_v14 = vpop.xlane.xlu0 %1257 }
 0xa3c   : > { %v1148_v15 = vadd.f32 %v1147_v13, %v1145_v12 }
 0xa3e   : > { %1150 = vst.msk [vmem:[#allocation2] sm:$0xff] %vm1149_vm8, %v1148_v15 }
 0xa3f   : > { %v1332_v34 = vpop.xlane.xlu0 %1331 }
 0xa40   : > { %v1334_v32 = vadd.f32 %v1332_v34, %v1258_v14 }
 0xa42   : > { %v1335_v63 = vmul.f32 %v3658_v11, %v1334_v32  ;;  %v1158_v11 = vsel %vm1157_vm1, %v3532_v62, %v1152_v19 }
 0xa43   : > { %v1445_v28 = vpop.xlane.xlu0 %1444  ;;  %v1345_v30 = vsel %vm1344_vm3, %v3609_v38, %v1158_v11 }
 0xa45   : > { %v2792_v60 = vpop.eup %2791  ;;  %v1333_v26 = vld [vmem:[#allocation2] sm:$0xff] }
 0xa46   : > { %v1336_v41 = vadd.f32 %v1335_v63, %v1333_v26  ;;  %2699 = vmatmul.mubr.f32.vlgmr.msra.gmra.mxu1 %v2792_v60 }
 0xa47   : > { %v1519_v20 = vpop.xlane.xlu0 %1518 }
 0xa48   : > { %1337 = vst.msk [vmem:[#allocation2] sm:$0xff] %vm1149_vm8, %v1336_v41  ;;  %v1521_v24 = vadd.f32 %v1519_v20, %v1445_v28 }
 0xa4a   : > { %v1522_v25 = vmul.f32 %v3475_v40, %v1521_v24  ;;  %v1532_v40 = vsel %vm1531_vm6, %v3718_v5, %v1345_v30 }
 0xa4b   : > { %v1632_v36 = vpop.xlane.xlu0 %1631 }
 0xa4f   : > { %v1520_v39 = vld [vmem:[#allocation2] sm:$0xff]  ;;  %v1706_v29 = vpop.xlane.xlu0 %1705 }
 0xa50   : > { %v1523_v59 = vadd.f32 %v1522_v25, %v1520_v39  ;;  %v1708_v16 = vadd.f32 %v1706_v29, %v1632_v36 }
 0xa52   : > { %1524 = vst.msk [vmem:[#allocation2] sm:$0xff] %vm1149_vm8, %v1523_v59  ;;  %v1709_v61 = vmul.f32 %v1966_v8, %v1708_v16 }
 0xa57   : > { %v1717_v17 = vpop.permute.xlu0 %1716 }
 0xa58   : > { %vm1718_vm9 = vcmp.eq.s32.totalorder %v1717_v17, 1 }
 0xa59   : > { %v1707_v33 = vld [vmem:[#allocation2] sm:$0xff]  ;;  %v1719_v22 = vsel %vm1718_vm9, %v3756_v46, %v1532_v40 }
 0xa5a   : > { %v1710_v6 = vadd.f32 %v1709_v61, %v1707_v33  ;;  %1720 = vst [vmem:[#allocation4] sm:$0xff] %v1719_v22 }
 0xa5c   : > { %1711 = vst.msk [vmem:[#allocation2] sm:$0xff] %vm1149_vm8, %v1710_v6 }
 0xb06   : > { %v1794_v21 = vpop.f32.mrf.mxu1 }
 0xb07   : > { %2793 = vlog2.f32 %v1794_v21 }
 0xb08   : > { %v2700_v62 = vpop.f32.mrf.mxu1 }
 0xb14   : > { %v2794_v47 = vpop.eup %2793 }
 0xb15   : > { %v1799_v37 = vmul.f32 0.6931472, %v2794_v47 }
 0xb17   : > { %v1800_v38 = vadd.f32 %v1799_v37, %v1724_v4 }
 0xb19   : > { %v1801_v48 = vadd.f32 %v1800_v38, %v3011_v55 }
 0xb1b   : > { %v1802_v45 = vadd.f32 %v1967_v7, %v1801_v48 }
 0xb1d   : > { %v1803_v31 = vsel %vm1718_vm9, %v1802_v45, %v3765_v18 }
 0xb1e   : > { %1804 = vst [vmem:[#allocation3] sm:$0xff] %v1803_v31 }
 0xb1f PF: > { %p1968_p7 = scmp.ne.s32.totalorder %s2819_s21, 1 }
 0xb21   : > { %1808 = sbr.rel (%p1968_p7) target bundleno = 3172 (0xc64), region = 56 }
 0xb26   : > { %v1969_v5 = vld [vmem:[%s3822_s4] ss:$0 sm:$0xff]  ;;  %v1822_v46 = vld [vmem:[#allocation3] sm:$0xff]  ;;  %v1811_v49 = vld [vmem:[#allocation4] sm:$0xff]  ;;  %vm1835_vm10 = vcmask 7168  }
 0xb27   : > { %v1823_v44 = vadd.f32 %v1969_v5, %v1822_v46  ;;  %v1818_v50 = vmul.f32 %v1969_v5, %v1811_v49  ;;  %v1810_v53 = vld [vmem:[#allocation2] sm:$0xff] }
 0xb29   : > { %1824 = vmax.xlane.f32.xlu0 %v1823_v44  ;;  %1819 = vadd.xlane.f32.xlu1 %v1818_v50 }
 0xbb2   : > { %v1825_v43 = vpop.xlane.xlu0 %1824  ;;  %v1820_v54 = vpop.xlane.xlu1 %1819 }
 0xbb3   : > { %v1826_v55 = vsub.f32 %v1823_v44, %v1825_v43  ;;  %v1821_v57 = vadd.f32 %v1820_v54, %v1810_v53 }
 0xbb5   : > { %v1827_v51 = vmul.f32 1.442695, %v1826_v55 }
 0xbb7   : > { %2795 = vpow2.f32 %v1827_v51 }
 0xbc4   : > { %v2796_v52 = vpop.eup %2795 }
 0xbc5   : > { %1829 = vadd.xlane.f32.xlu0 %v2796_v52 }
 0xc4e   : > { %v1830_v42 = vpop.xlane.xlu0 %1829 }
 0xc4f   : > { %2797 = vlog2.f32 %v1830_v42 }
 0xc5c   : > { %v2798_v18 = vpop.eup %2797 }
 0xc5d   : > { %v1832_v56 = vmul.f32 0.6931472, %v2798_v18 }
 0xc5f   : > { %v1833_v58 = vadd.f32 %v1832_v56, %v1825_v43 }
 0xc61   : > { %v1834_v35 = vsub.f32 %v1821_v57, %v1833_v58 }
 0xc63   : > { %1836 = vst.msk [vmem:[%s3824_s6] sm:$0xff] %vm1835_vm10, %v1834_v35 }
 0xc64 PF: > { %s16_s23 = sadd.s32 1, %s2827_s23   ;;  %s3825_s21 = smov %s2823_s22 }
 0xc65   : > { %p13_p8 = scmp.ge.s32.totalorder %s16_s23, 4   ;;  %s3826_s22 = smov %s3828_s24 }
 0xc67   :  { %15 = sbr.rel (!%p13_p8) target bundleno = 2 (0x2), region = 110 }

</bundles_post_ra>
